<compile_context>
chip_gen: v7x
topology: tpu7x:2x2x1
jax: 0.10.0
libtpu: 0.0.40
codegen_flags: <defaults>
</compile_context>

<pallas_src>
import jax
import jax.numpy as jnp
from jax.experimental import pallas as pl
from jax.experimental.pallas import tpu as pltpu

# ----------------------------- shapes (small) -----------------------------
B = 2          # batch
T = 8          # sequence length
D_IN = 16      # value_input_dim
H_FC = 32      # fc_hidden_dim
H_LSTM = 32    # lstm_hidden_dim
OUT = 1        # output_dim
EPS = 1e-5     # BatchNorm1d eps (PyTorch default)


# ----------------------- fused Critic forward kernel -----------------------
def critic_kernel(x_ref, w1_ref, b1_ref, wcat_ref, bcat_ref, wout_ref, bout_ref,
                  val_ref, h_ref, c_ref):
    x = x_ref[...]                        # (B, T, D)
    w1 = w1_ref[...]                      # (D, H_FC)   (BN already folded in)
    b1 = b1_ref[...]                      # (1, H_FC)
    w_cat = wcat_ref[...]                 # (H_FC+H, 4H), gate order [i, f, g, o]
    b_cat = bcat_ref[...]                 # (1, 4H)
    w_out = wout_ref[...]                 # (1, H)
    b_out = bout_ref[...]                 # (1, OUT)

    Bn, Tn, _ = x.shape
    H = h_ref.shape[-1]

    # TODO(synk): optional non-None initial hidden_state is not plumbed in;
    # zeros are used (the hidden_state=None path of the PyTorch forward).
    h = jnp.zeros((Bn, H), jnp.float32)
    c = jnp.zeros((Bn, H), jnp.float32)
    vals = []

    # Fully unrolled in-kernel time loop (static T): all indices are static,
    # h/c live in vregs, nothing is written back per step.
    for t in range(Tn):
        x_t = x[:, t, :]                                              # (B, D)
        # (folded BN +) Linear + ReLU
        y_t = jnp.maximum(
            jnp.dot(x_t, w1, preferred_element_type=jnp.float32) + b1, 0.0)
        # all four gates in a single 128-lane matmul
        xh = jnp.concatenate([y_t, h], axis=-1)                       # (B, H_FC+H)
        gates = (jnp.dot(xh, w_cat, preferred_element_type=jnp.float32)
                 + b_cat)                                             # (B, 4H)
        i_g = jax.nn.sigmoid(gates[:, 0 * H:1 * H])
        f_g = jax.nn.sigmoid(gates[:, 1 * H:2 * H])
        g_g = jnp.tanh(gates[:, 2 * H:3 * H])
        o_g = jax.nn.sigmoid(gates[:, 3 * H:4 * H])
        c = f_g * c + i_g * g_g
        h = o_g * jnp.tanh(c)
        # value head: VPU multiply + lane reduction (avoids a (H,1) MXU matmul)
        vals.append(jnp.sum(h * w_out, axis=-1, keepdims=True) + b_out)  # (B, 1)

    val_ref[...] = jnp.concatenate(vals, axis=-1)     # (B, T), stored once
    h_ref[...] = h                                    # stored once (final state)
    c_ref[...] = c


def critic_pallas(x, kp):
    Bn, Tn, D = x.shape
    Hf = kp["w1"].shape[1]
    H = kp["w_out"].shape[1]
    G4 = kp["w_cat"].shape[1]
    return pl.pallas_call(
        critic_kernel,
        out_shape=(
            jax.ShapeDtypeStruct((Bn, Tn), jnp.float32),   # values (B, T)
            jax.ShapeDtypeStruct((Bn, H), jnp.float32),    # h_n
            jax.ShapeDtypeStruct((Bn, H), jnp.float32),    # c_n
        ),
        grid=(1,),
        in_specs=[
            pl.BlockSpec((Bn, Tn, D), lambda i: (0, 0, 0)),
            pl.BlockSpec((D, Hf), lambda i: (0, 0)),
            pl.BlockSpec((1, Hf), lambda i: (0, 0)),
            pl.BlockSpec((Hf + H, G4), lambda i: (0, 0)),
            pl.BlockSpec((1, G4), lambda i: (0, 0)),
            pl.BlockSpec((1, H), lambda i: (0, 0)),
            pl.BlockSpec((1, OUT), lambda i: (0, 0)),
        ],
        out_specs=(
            pl.BlockSpec((Bn, Tn), lambda i: (0, 0)),
            pl.BlockSpec((Bn, H), lambda i: (0, 0)),
            pl.BlockSpec((Bn, H), lambda i: (0, 0)),
        ),
        compiler_params=pltpu.CompilerParams(
            dimension_semantics=("arbitrary",)),
    )(x, kp["w1"], kp["b1"], kp["w_cat"], kp["b_cat"], kp["w_out"], kp["b_out"])


# ------------------------------- wrapper -----------------------------------
def critic_forward(x, kp):
    """x: (B, T, D_in) f32. Returns (values (B,T,1), (h_n (1,B,H), c_n (1,B,H)))."""
    vals, h_n, c_n = critic_pallas(x, kp)
    values = vals[..., None]                          # (B, T, 1) — free reshape
    hidden_state = (h_n[None, ...], c_n[None, ...])   # (1, B, H) each (nn.LSTM layout)
    return values, hidden_state


# --------------------------- parameters (host) ------------------------------
def init_params(key):
    ks = jax.random.split(key, 12)
    u = lambda k, shape, s: jax.random.uniform(k, shape, jnp.float32, -s, s)
    return {
        # BatchNorm1d(value_input_dim), eval mode (running stats)
        # TODO(synk): train-mode batch-statistics BN is not modeled.
        "bn_gamma": u(ks[0], (D_IN,), 1.0) + 1.0,
        "bn_beta": u(ks[1], (D_IN,), 0.1),
        "bn_mean": u(ks[2], (D_IN,), 0.5),
        "bn_var": jax.random.uniform(ks[3], (D_IN,), jnp.float32, 0.5, 1.5),
        # Linear(D_IN -> H_FC), stored (in, out)
        "w1": u(ks[4], (D_IN, H_FC), 1.0 / (D_IN ** 0.5)),
        "b1": u(ks[5], (H_FC,), 1.0 / (D_IN ** 0.5)),
        # LSTM(H_FC -> H_LSTM), gate order [i, f, g, o], stored (gate, in, out)
        "w_ih": u(ks[6], (4, H_FC, H_LSTM), 1.0 / (H_LSTM ** 0.5)),
        "w_hh": u(ks[7], (4, H_LSTM, H_LSTM), 1.0 / (H_LSTM ** 0.5)),
        "b_ih": u(ks[8], (4, H_LSTM), 1.0 / (H_LSTM ** 0.5)),
        "b_hh": u(ks[9], (4, H_LSTM), 1.0 / (H_LSTM ** 0.5)),
        # Linear(H_LSTM -> OUT)
        "w_out": u(ks[10], (H_LSTM, OUT), 1.0 / (H_LSTM ** 0.5)),
        "b_out": u(ks[11], (OUT,), 1.0 / (H_LSTM ** 0.5)),
    }


def prepare_params(p):
    """One-time host-side prep: fold eval-mode BN into the first Linear and
    concatenate the four LSTM gate weights into one (H_FC+H, 4H) matrix."""
    s = p["bn_gamma"] * jax.lax.rsqrt(p["bn_var"] + EPS)            # (D,)
    w1 = s[:, None] * p["w1"]                                       # (D, H_FC)
    b1 = p["b1"] + (p["bn_beta"] - p["bn_mean"] * s) @ p["w1"]      # (H_FC,)
    w_cat = jnp.concatenate(
        [jnp.transpose(p["w_ih"], (1, 0, 2)).reshape(H_FC, 4 * H_LSTM),
         jnp.transpose(p["w_hh"], (1, 0, 2)).reshape(H_LSTM, 4 * H_LSTM)],
        axis=0)                                                     # (H_FC+H, 4H)
    b_cat = (p["b_ih"] + p["b_hh"]).reshape(1, 4 * H_LSTM)
    return {
        "w1": w1,
        "b1": b1.reshape(1, H_FC),
        "w_cat": w_cat,
        "b_cat": b_cat,
        "w_out": p["w_out"].reshape(1, H_LSTM),   # row vector for VPU dot
        "b_out": p["b_out"].reshape(1, OUT),
    }


# ------------------------- pure-JAX reference (check) -----------------------
def critic_reference(x, p):
    """Non-Pallas reference matching the PyTorch Critic in eval mode."""
    s = p["bn_gamma"] * jax.lax.rsqrt(p["bn_var"] + EPS)
    xn = (x - p["bn_mean"]) * s + p["bn_beta"]                      # BN over features
    y = jax.nn.relu(jnp.einsum("btd,dh->bth", xn, p["w1"]) + p["b1"])
    Bn, Tn, _ = x.shape
    h = jnp.zeros((Bn, H_LSTM), jnp.float32)
    c = jnp.zeros((Bn, H_LSTM), jnp.float32)
    outs = []
    for t in range(Tn):
        x_t = y[:, t, :]
        g = [x_t @ p["w_ih"][k] + h @ p["w_hh"][k] + p["b_ih"][k] + p["b_hh"][k]
             for k in range(4)]
        i_g = jax.nn.sigmoid(g[0])
        f_g = jax.nn.sigmoid(g[1])
        g_g = jnp.tanh(g[2])
        o_g = jax.nn.sigmoid(g[3])
        c = f_g * c + i_g * g_g
        h = o_g * jnp.tanh(c)
        outs.append(h @ p["w_out"] + p["b_out"])
    values = jnp.stack(outs, axis=1)                                # (B, T, 1)
    return values, (h[None, ...], c[None, ...])


if __name__ == "__main__":
    key = jax.random.PRNGKey(0)
    k_x, k_p = jax.random.split(key)
    x = jax.random.normal(k_x, (B, T, D_IN), jnp.float32)
    raw_params = init_params(k_p)
    kp = prepare_params(raw_params)

    fwd = jax.jit(critic_forward)
    values, (h_n, c_n) = fwd(x, kp)
    jax.block_until_ready((values, h_n, c_n))

    assert values.shape == (B, T, OUT)
    assert h_n.shape == (1, B, H_LSTM) and c_n.shape == (1, B, H_LSTM)

    # correctness against a pure-JAX reference of the same module
    v_r, (h_r, c_r) = critic_reference(x, raw_params)
    assert float(jnp.max(jnp.abs(values - v_r))) < 1e-4
    assert float(jnp.max(jnp.abs(h_n - h_r))) < 1e-4
    assert float(jnp.max(jnp.abs(c_n - c_r))) < 1e-4

    print("KERNEL_OK")
</pallas_src>

<mosaic_0001>
module attributes {stable_mosaic.version = 11 : i64} {
  func.func @critic_kernel(%arg0: i32, %arg1: memref<2x8x16xf32, #tpu.memory_space<vmem>>, %arg2: memref<16x32xf32, #tpu.memory_space<vmem>>, %arg3: memref<1x32xf32, #tpu.memory_space<vmem>>, %arg4: memref<64x128xf32, #tpu.memory_space<vmem>>, %arg5: memref<1x128xf32, #tpu.memory_space<vmem>>, %arg6: memref<1x32xf32, #tpu.memory_space<vmem>>, %arg7: memref<1x1xf32, #tpu.memory_space<vmem>>, %arg8: memref<2x8xf32, #tpu.memory_space<vmem>>, %arg9: memref<2x32xf32, #tpu.memory_space<vmem>>, %arg10: memref<2x32xf32, #tpu.memory_space<vmem>>) attributes {dimension_semantics = [#tpu.dimension_semantics<arbitrary>], iteration_bounds = array<i64: 1>, scalar_prefetch = 0 : i64, scratch_operands = 0 : i64, tpu.core_type = #tpu.core_type<tc>, window_params = [{pipeline_mode = #tpu.pipeline_mode<synchronous>, transform_indices = @transform_0, window_bounds = array<i64: 2, 8, 16>}, {pipeline_mode = #tpu.pipeline_mode<synchronous>, transform_indices = @transform_1, window_bounds = array<i64: 16, 32>}, {pipeline_mode = #tpu.pipeline_mode<synchronous>, transform_indices = @transform_2, window_bounds = array<i64: 1, 32>}, {pipeline_mode = #tpu.pipeline_mode<synchronous>, transform_indices = @transform_3, window_bounds = array<i64: 64, 128>}, {pipeline_mode = #tpu.pipeline_mode<synchronous>, transform_indices = @transform_4, window_bounds = array<i64: 1, 128>}, {pipeline_mode = #tpu.pipeline_mode<synchronous>, transform_indices = @transform_5, window_bounds = array<i64: 1, 32>}, {pipeline_mode = #tpu.pipeline_mode<synchronous>, transform_indices = @transform_6, window_bounds = array<i64: 1, 1>}, {pipeline_mode = #tpu.pipeline_mode<synchronous>, transform_indices = @transform_7, window_bounds = array<i64: 2, 8>}, {pipeline_mode = #tpu.pipeline_mode<synchronous>, transform_indices = @transform_8, window_bounds = array<i64: 2, 32>}, {pipeline_mode = #tpu.pipeline_mode<synchronous>, transform_indices = @transform_9, window_bounds = array<i64: 2, 32>}]} {
    %c0 = arith.constant 0 : index
    %c0_0 = arith.constant 0 : index
    %c0_1 = arith.constant 0 : index
    %0 = vector.load %arg1[%c0, %c0_0, %c0_1] : memref<2x8x16xf32, #tpu.memory_space<vmem>>, vector<2x8x16xf32>
    %c0_2 = arith.constant 0 : index
    %c0_3 = arith.constant 0 : index
    %1 = vector.load %arg2[%c0_2, %c0_3] : memref<16x32xf32, #tpu.memory_space<vmem>>, vector<16x32xf32>
    %c0_4 = arith.constant 0 : index
    %c0_5 = arith.constant 0 : index
    %2 = vector.load %arg3[%c0_4, %c0_5] : memref<1x32xf32, #tpu.memory_space<vmem>>, vector<1x32xf32>
    %c0_6 = arith.constant 0 : index
    %c0_7 = arith.constant 0 : index
    %3 = vector.load %arg4[%c0_6, %c0_7] : memref<64x128xf32, #tpu.memory_space<vmem>>, vector<64x128xf32>
    %c0_8 = arith.constant 0 : index
    %c0_9 = arith.constant 0 : index
    %4 = vector.load %arg5[%c0_8, %c0_9] : memref<1x128xf32, #tpu.memory_space<vmem>>, vector<1x128xf32>
    %c0_10 = arith.constant 0 : index
    %c0_11 = arith.constant 0 : index
    %5 = vector.load %arg6[%c0_10, %c0_11] : memref<1x32xf32, #tpu.memory_space<vmem>>, vector<1x32xf32>
    %c0_12 = arith.constant 0 : index
    %c0_13 = arith.constant 0 : index
    %6 = vector.load %arg7[%c0_12, %c0_13] : memref<1x1xf32, #tpu.memory_space<vmem>>, vector<1x1xf32>
    %cst = arith.constant 0.000000e+00 : f32
    %7 = vector.broadcast %cst : f32 to vector<2x32xf32>
    %cst_14 = arith.constant 0.000000e+00 : f32
    %8 = vector.broadcast %cst_14 : f32 to vector<2x32xf32>
    %9 = vector.extract_strided_slice %0 {offsets = [0, 0, 0], sizes = [2, 1, 16], strides = [1, 1, 1]} : vector<2x8x16xf32> to vector<2x1x16xf32>
    %10 = vector.shape_cast %9 : vector<2x1x16xf32> to vector<2x16xf32>
    %cst_15 = arith.constant dense<0.000000e+00> : vector<2x32xf32>
    %11 = tpu.matmul %10, %1, %cst_15 {dimension_numbers = #tpu.dot_dimension_numbers<[1], [0], [0], [1], [0, 0, 1, 1], [], []>} : vector<2x16xf32>, vector<16x32xf32>, vector<2x32xf32> -> vector<2x32xf32>
    %12 = vector.broadcast %2 : vector<1x32xf32> to vector<2x32xf32>
    %13 = arith.addf %11, %12 : vector<2x32xf32>
    %cst_16 = arith.constant 0.000000e+00 : f32
    %14 = vector.broadcast %cst_16 : f32 to vector<2x32xf32>
    %15 = arith.maximumf %13, %14 : vector<2x32xf32>
    %16 = tpu.concatenate %15, %7 in 1 : vector<2x32xf32>, vector<2x32xf32> -> vector<2x64xf32>
    %cst_17 = arith.constant dense<0.000000e+00> : vector<2x128xf32>
    %17 = tpu.matmul %16, %3, %cst_17 {dimension_numbers = #tpu.dot_dimension_numbers<[1], [0], [0], [1], [0, 0, 1, 1], [], []>} : vector<2x64xf32>, vector<64x128xf32>, vector<2x128xf32> -> vector<2x128xf32>
    %18 = vector.broadcast %4 : vector<1x128xf32> to vector<2x128xf32>
    %19 = arith.addf %17, %18 : vector<2x128xf32>
    %20 = vector.extract_strided_slice %19 {offsets = [0, 0], sizes = [2, 32], strides = [1, 1]} : vector<2x128xf32> to vector<2x32xf32>
    %21 = arith.negf %20 : vector<2x32xf32>
    %22 = math.exp %21 : vector<2x32xf32>
    %cst_18 = arith.constant 1.000000e+00 : f32
    %23 = vector.broadcast %cst_18 : f32 to vector<2x32xf32>
    %24 = arith.addf %23, %22 : vector<2x32xf32>
    %25 = arith.divf %23, %24 : vector<2x32xf32>
    %26 = vector.extract_strided_slice %19 {offsets = [0, 32], sizes = [2, 32], strides = [1, 1]} : vector<2x128xf32> to vector<2x32xf32>
    %27 = arith.negf %26 : vector<2x32xf32>
    %28 = math.exp %27 : vector<2x32xf32>
    %cst_19 = arith.constant 1.000000e+00 : f32
    %29 = vector.broadcast %cst_19 : f32 to vector<2x32xf32>
    %30 = arith.addf %29, %28 : vector<2x32xf32>
    %31 = arith.divf %29, %30 : vector<2x32xf32>
    %32 = vector.extract_strided_slice %19 {offsets = [0, 64], sizes = [2, 32], strides = [1, 1]} : vector<2x128xf32> to vector<2x32xf32>
    %33 = math.tanh %32 : vector<2x32xf32>
    %34 = vector.extract_strided_slice %19 {offsets = [0, 96], sizes = [2, 32], strides = [1, 1]} : vector<2x128xf32> to vector<2x32xf32>
    %35 = arith.negf %34 : vector<2x32xf32>
    %36 = math.exp %35 : vector<2x32xf32>
    %cst_20 = arith.constant 1.000000e+00 : f32
    %37 = vector.broadcast %cst_20 : f32 to vector<2x32xf32>
    %38 = arith.addf %37, %36 : vector<2x32xf32>
    %39 = arith.divf %37, %38 : vector<2x32xf32>
    %40 = arith.mulf %31, %8 : vector<2x32xf32>
    %41 = arith.mulf %25, %33 : vector<2x32xf32>
    %42 = arith.addf %40, %41 : vector<2x32xf32>
    %43 = math.tanh %42 : vector<2x32xf32>
    %44 = arith.mulf %39, %43 : vector<2x32xf32>
    %45 = vector.broadcast %5 : vector<1x32xf32> to vector<2x32xf32>
    %46 = arith.mulf %44, %45 : vector<2x32xf32>
    %cst_21 = arith.constant dense<0.000000e+00> : vector<2xf32>
    %47 = vector.multi_reduction <add>, %46, %cst_21 [1] : vector<2x32xf32> to vector<2xf32>
    %48 = vector.shape_cast %47 : vector<2xf32> to vector<2x1xf32>
    %49 = vector.broadcast %6 : vector<1x1xf32> to vector<2x1xf32>
    %50 = arith.addf %48, %49 : vector<2x1xf32>
    %51 = vector.extract_strided_slice %0 {offsets = [0, 1, 0], sizes = [2, 1, 16], strides = [1, 1, 1]} : vector<2x8x16xf32> to vector<2x1x16xf32>
    %52 = vector.shape_cast %51 : vector<2x1x16xf32> to vector<2x16xf32>
    %cst_22 = arith.constant dense<0.000000e+00> : vector<2x32xf32>
    %53 = tpu.matmul %52, %1, %cst_22 {dimension_numbers = #tpu.dot_dimension_numbers<[1], [0], [0], [1], [0, 0, 1, 1], [], []>} : vector<2x16xf32>, vector<16x32xf32>, vector<2x32xf32> -> vector<2x32xf32>
    %54 = vector.broadcast %2 : vector<1x32xf32> to vector<2x32xf32>
    %55 = arith.addf %53, %54 : vector<2x32xf32>
    %cst_23 = arith.constant 0.000000e+00 : f32
    %56 = vector.broadcast %cst_23 : f32 to vector<2x32xf32>
    %57 = arith.maximumf %55, %56 : vector<2x32xf32>
    %58 = tpu.concatenate %57, %44 in 1 : vector<2x32xf32>, vector<2x32xf32> -> vector<2x64xf32>
    %cst_24 = arith.constant dense<0.000000e+00> : vector<2x128xf32>
    %59 = tpu.matmul %58, %3, %cst_24 {dimension_numbers = #tpu.dot_dimension_numbers<[1], [0], [0], [1], [0, 0, 1, 1], [], []>} : vector<2x64xf32>, vector<64x128xf32>, vector<2x128xf32> -> vector<2x128xf32>
    %60 = vector.broadcast %4 : vector<1x128xf32> to vector<2x128xf32>
    %61 = arith.addf %59, %60 : vector<2x128xf32>
    %62 = vector.extract_strided_slice %61 {offsets = [0, 0], sizes = [2, 32], strides = [1, 1]} : vector<2x128xf32> to vector<2x32xf32>
    %63 = arith.negf %62 : vector<2x32xf32>
    %64 = math.exp %63 : vector<2x32xf32>
    %cst_25 = arith.constant 1.000000e+00 : f32
    %65 = vector.broadcast %cst_25 : f32 to vector<2x32xf32>
    %66 = arith.addf %65, %64 : vector<2x32xf32>
    %67 = arith.divf %65, %66 : vector<2x32xf32>
    %68 = vector.extract_strided_slice %61 {offsets = [0, 32], sizes = [2, 32], strides = [1, 1]} : vector<2x128xf32> to vector<2x32xf32>
    %69 = arith.negf %68 : vector<2x32xf32>
    %70 = math.exp %69 : vector<2x32xf32>
    %cst_26 = arith.constant 1.000000e+00 : f32
    %71 = vector.broadcast %cst_26 : f32 to vector<2x32xf32>
    %72 = arith.addf %71, %70 : vector<2x32xf32>
    %73 = arith.divf %71, %72 : vector<2x32xf32>
    %74 = vector.extract_strided_slice %61 {offsets = [0, 64], sizes = [2, 32], strides = [1, 1]} : vector<2x128xf32> to vector<2x32xf32>
    %75 = math.tanh %74 : vector<2x32xf32>
    %76 = vector.extract_strided_slice %61 {offsets = [0, 96], sizes = [2, 32], strides = [1, 1]} : vector<2x128xf32> to vector<2x32xf32>
    %77 = arith.negf %76 : vector<2x32xf32>
    %78 = math.exp %77 : vector<2x32xf32>
    %cst_27 = arith.constant 1.000000e+00 : f32
    %79 = vector.broadcast %cst_27 : f32 to vector<2x32xf32>
    %80 = arith.addf %79, %78 : vector<2x32xf32>
    %81 = arith.divf %79, %80 : vector<2x32xf32>
    %82 = arith.mulf %73, %42 : vector<2x32xf32>
    %83 = arith.mulf %67, %75 : vector<2x32xf32>
    %84 = arith.addf %82, %83 : vector<2x32xf32>
    %85 = math.tanh %84 : vector<2x32xf32>
    %86 = arith.mulf %81, %85 : vector<2x32xf32>
    %87 = vector.broadcast %5 : vector<1x32xf32> to vector<2x32xf32>
    %88 = arith.mulf %86, %87 : vector<2x32xf32>
    %cst_28 = arith.constant dense<0.000000e+00> : vector<2xf32>
    %89 = vector.multi_reduction <add>, %88, %cst_28 [1] : vector<2x32xf32> to vector<2xf32>
    %90 = vector.shape_cast %89 : vector<2xf32> to vector<2x1xf32>
    %91 = vector.broadcast %6 : vector<1x1xf32> to vector<2x1xf32>
    %92 = arith.addf %90, %91 : vector<2x1xf32>
    %93 = vector.extract_strided_slice %0 {offsets = [0, 2, 0], sizes = [2, 1, 16], strides = [1, 1, 1]} : vector<2x8x16xf32> to vector<2x1x16xf32>
    %94 = vector.shape_cast %93 : vector<2x1x16xf32> to vector<2x16xf32>
    %cst_29 = arith.constant dense<0.000000e+00> : vector<2x32xf32>
    %95 = tpu.matmul %94, %1, %cst_29 {dimension_numbers = #tpu.dot_dimension_numbers<[1], [0], [0], [1], [0, 0, 1, 1], [], []>} : vector<2x16xf32>, vector<16x32xf32>, vector<2x32xf32> -> vector<2x32xf32>
    %96 = vector.broadcast %2 : vector<1x32xf32> to vector<2x32xf32>
    %97 = arith.addf %95, %96 : vector<2x32xf32>
    %cst_30 = arith.constant 0.000000e+00 : f32
    %98 = vector.broadcast %cst_30 : f32 to vector<2x32xf32>
    %99 = arith.maximumf %97, %98 : vector<2x32xf32>
    %100 = tpu.concatenate %99, %86 in 1 : vector<2x32xf32>, vector<2x32xf32> -> vector<2x64xf32>
    %cst_31 = arith.constant dense<0.000000e+00> : vector<2x128xf32>
    %101 = tpu.matmul %100, %3, %cst_31 {dimension_numbers = #tpu.dot_dimension_numbers<[1], [0], [0], [1], [0, 0, 1, 1], [], []>} : vector<2x64xf32>, vector<64x128xf32>, vector<2x128xf32> -> vector<2x128xf32>
    %102 = vector.broadcast %4 : vector<1x128xf32> to vector<2x128xf32>
    %103 = arith.addf %101, %102 : vector<2x128xf32>
    %104 = vector.extract_strided_slice %103 {offsets = [0, 0], sizes = [2, 32], strides = [1, 1]} : vector<2x128xf32> to vector<2x32xf32>
    %105 = arith.negf %104 : vector<2x32xf32>
    %106 = math.exp %105 : vector<2x32xf32>
    %cst_32 = arith.constant 1.000000e+00 : f32
    %107 = vector.broadcast %cst_32 : f32 to vector<2x32xf32>
    %108 = arith.addf %107, %106 : vector<2x32xf32>
    %109 = arith.divf %107, %108 : vector<2x32xf32>
    %110 = vector.extract_strided_slice %103 {offsets = [0, 32], sizes = [2, 32], strides = [1, 1]} : vector<2x128xf32> to vector<2x32xf32>
    %111 = arith.negf %110 : vector<2x32xf32>
    %112 = math.exp %111 : vector<2x32xf32>
    %cst_33 = arith.constant 1.000000e+00 : f32
    %113 = vector.broadcast %cst_33 : f32 to vector<2x32xf32>
    %114 = arith.addf %113, %112 : vector<2x32xf32>
    %115 = arith.divf %113, %114 : vector<2x32xf32>
    %116 = vector.extract_strided_slice %103 {offsets = [0, 64], sizes = [2, 32], strides = [1, 1]} : vector<2x128xf32> to vector<2x32xf32>
    %117 = math.tanh %116 : vector<2x32xf32>
    %118 = vector.extract_strided_slice %103 {offsets = [0, 96], sizes = [2, 32], strides = [1, 1]} : vector<2x128xf32> to vector<2x32xf32>
    %119 = arith.negf %118 : vector<2x32xf32>
    %120 = math.exp %119 : vector<2x32xf32>
    %cst_34 = arith.constant 1.000000e+00 : f32
    %121 = vector.broadcast %cst_34 : f32 to vector<2x32xf32>
    %122 = arith.addf %121, %120 : vector<2x32xf32>
    %123 = arith.divf %121, %122 : vector<2x32xf32>
    %124 = arith.mulf %115, %84 : vector<2x32xf32>
    %125 = arith.mulf %109, %117 : vector<2x32xf32>
    %126 = arith.addf %124, %125 : vector<2x32xf32>
    %127 = math.tanh %126 : vector<2x32xf32>
    %128 = arith.mulf %123, %127 : vector<2x32xf32>
    %129 = vector.broadcast %5 : vector<1x32xf32> to vector<2x32xf32>
    %130 = arith.mulf %128, %129 : vector<2x32xf32>
    %cst_35 = arith.constant dense<0.000000e+00> : vector<2xf32>
    %131 = vector.multi_reduction <add>, %130, %cst_35 [1] : vector<2x32xf32> to vector<2xf32>
    %132 = vector.shape_cast %131 : vector<2xf32> to vector<2x1xf32>
    %133 = vector.broadcast %6 : vector<1x1xf32> to vector<2x1xf32>
    %134 = arith.addf %132, %133 : vector<2x1xf32>
    %135 = vector.extract_strided_slice %0 {offsets = [0, 3, 0], sizes = [2, 1, 16], strides = [1, 1, 1]} : vector<2x8x16xf32> to vector<2x1x16xf32>
    %136 = vector.shape_cast %135 : vector<2x1x16xf32> to vector<2x16xf32>
    %cst_36 = arith.constant dense<0.000000e+00> : vector<2x32xf32>
    %137 = tpu.matmul %136, %1, %cst_36 {dimension_numbers = #tpu.dot_dimension_numbers<[1], [0], [0], [1], [0, 0, 1, 1], [], []>} : vector<2x16xf32>, vector<16x32xf32>, vector<2x32xf32> -> vector<2x32xf32>
    %138 = vector.broadcast %2 : vector<1x32xf32> to vector<2x32xf32>
    %139 = arith.addf %137, %138 : vector<2x32xf32>
    %cst_37 = arith.constant 0.000000e+00 : f32
    %140 = vector.broadcast %cst_37 : f32 to vector<2x32xf32>
    %141 = arith.maximumf %139, %140 : vector<2x32xf32>
    %142 = tpu.concatenate %141, %128 in 1 : vector<2x32xf32>, vector<2x32xf32> -> vector<2x64xf32>
    %cst_38 = arith.constant dense<0.000000e+00> : vector<2x128xf32>
    %143 = tpu.matmul %142, %3, %cst_38 {dimension_numbers = #tpu.dot_dimension_numbers<[1], [0], [0], [1], [0, 0, 1, 1], [], []>} : vector<2x64xf32>, vector<64x128xf32>, vector<2x128xf32> -> vector<2x128xf32>
    %144 = vector.broadcast %4 : vector<1x128xf32> to vector<2x128xf32>
    %145 = arith.addf %143, %144 : vector<2x128xf32>
    %146 = vector.extract_strided_slice %145 {offsets = [0, 0], sizes = [2, 32], strides = [1, 1]} : vector<2x128xf32> to vector<2x32xf32>
    %147 = arith.negf %146 : vector<2x32xf32>
    %148 = math.exp %147 : vector<2x32xf32>
    %cst_39 = arith.constant 1.000000e+00 : f32
    %149 = vector.broadcast %cst_39 : f32 to vector<2x32xf32>
    %150 = arith.addf %149, %148 : vector<2x32xf32>
    %151 = arith.divf %149, %150 : vector<2x32xf32>
    %152 = vector.extract_strided_slice %145 {offsets = [0, 32], sizes = [2, 32], strides = [1, 1]} : vector<2x128xf32> to vector<2x32xf32>
    %153 = arith.negf %152 : vector<2x32xf32>
    %154 = math.exp %153 : vector<2x32xf32>
    %cst_40 = arith.constant 1.000000e+00 : f32
    %155 = vector.broadcast %cst_40 : f32 to vector<2x32xf32>
    %156 = arith.addf %155, %154 : vector<2x32xf32>
    %157 = arith.divf %155, %156 : vector<2x32xf32>
    %158 = vector.extract_strided_slice %145 {offsets = [0, 64], sizes = [2, 32], strides = [1, 1]} : vector<2x128xf32> to vector<2x32xf32>
    %159 = math.tanh %158 : vector<2x32xf32>
    %160 = vector.extract_strided_slice %145 {offsets = [0, 96], sizes = [2, 32], strides = [1, 1]} : vector<2x128xf32> to vector<2x32xf32>
    %161 = arith.negf %160 : vector<2x32xf32>
    %162 = math.exp %161 : vector<2x32xf32>
    %cst_41 = arith.constant 1.000000e+00 : f32
    %163 = vector.broadcast %cst_41 : f32 to vector<2x32xf32>
    %164 = arith.addf %163, %162 : vector<2x32xf32>
    %165 = arith.divf %163, %164 : vector<2x32xf32>
    %166 = arith.mulf %157, %126 : vector<2x32xf32>
    %167 = arith.mulf %151, %159 : vector<2x32xf32>
    %168 = arith.addf %166, %167 : vector<2x32xf32>
    %169 = math.tanh %168 : vector<2x32xf32>
    %170 = arith.mulf %165, %169 : vector<2x32xf32>
    %171 = vector.broadcast %5 : vector<1x32xf32> to vector<2x32xf32>
    %172 = arith.mulf %170, %171 : vector<2x32xf32>
    %cst_42 = arith.constant dense<0.000000e+00> : vector<2xf32>
    %173 = vector.multi_reduction <add>, %172, %cst_42 [1] : vector<2x32xf32> to vector<2xf32>
    %174 = vector.shape_cast %173 : vector<2xf32> to vector<2x1xf32>
    %175 = vector.broadcast %6 : vector<1x1xf32> to vector<2x1xf32>
    %176 = arith.addf %174, %175 : vector<2x1xf32>
    %177 = vector.extract_strided_slice %0 {offsets = [0, 4, 0], sizes = [2, 1, 16], strides = [1, 1, 1]} : vector<2x8x16xf32> to vector<2x1x16xf32>
    %178 = vector.shape_cast %177 : vector<2x1x16xf32> to vector<2x16xf32>
    %cst_43 = arith.constant dense<0.000000e+00> : vector<2x32xf32>
    %179 = tpu.matmul %178, %1, %cst_43 {dimension_numbers = #tpu.dot_dimension_numbers<[1], [0], [0], [1], [0, 0, 1, 1], [], []>} : vector<2x16xf32>, vector<16x32xf32>, vector<2x32xf32> -> vector<2x32xf32>
    %180 = vector.broadcast %2 : vector<1x32xf32> to vector<2x32xf32>
    %181 = arith.addf %179, %180 : vector<2x32xf32>
    %cst_44 = arith.constant 0.000000e+00 : f32
    %182 = vector.broadcast %cst_44 : f32 to vector<2x32xf32>
    %183 = arith.maximumf %181, %182 : vector<2x32xf32>
    %184 = tpu.concatenate %183, %170 in 1 : vector<2x32xf32>, vector<2x32xf32> -> vector<2x64xf32>
    %cst_45 = arith.constant dense<0.000000e+00> : vector<2x128xf32>
    %185 = tpu.matmul %184, %3, %cst_45 {dimension_numbers = #tpu.dot_dimension_numbers<[1], [0], [0], [1], [0, 0, 1, 1], [], []>} : vector<2x64xf32>, vector<64x128xf32>, vector<2x128xf32> -> vector<2x128xf32>
    %186 = vector.broadcast %4 : vector<1x128xf32> to vector<2x128xf32>
    %187 = arith.addf %185, %186 : vector<2x128xf32>
    %188 = vector.extract_strided_slice %187 {offsets = [0, 0], sizes = [2, 32], strides = [1, 1]} : vector<2x128xf32> to vector<2x32xf32>
    %189 = arith.negf %188 : vector<2x32xf32>
    %190 = math.exp %189 : vector<2x32xf32>
    %cst_46 = arith.constant 1.000000e+00 : f32
    %191 = vector.broadcast %cst_46 : f32 to vector<2x32xf32>
    %192 = arith.addf %191, %190 : vector<2x32xf32>
    %193 = arith.divf %191, %192 : vector<2x32xf32>
    %194 = vector.extract_strided_slice %187 {offsets = [0, 32], sizes = [2, 32], strides = [1, 1]} : vector<2x128xf32> to vector<2x32xf32>
    %195 = arith.negf %194 : vector<2x32xf32>
    %196 = math.exp %195 : vector<2x32xf32>
    %cst_47 = arith.constant 1.000000e+00 : f32
    %197 = vector.broadcast %cst_47 : f32 to vector<2x32xf32>
    %198 = arith.addf %197, %196 : vector<2x32xf32>
    %199 = arith.divf %197, %198 : vector<2x32xf32>
    %200 = vector.extract_strided_slice %187 {offsets = [0, 64], sizes = [2, 32], strides = [1, 1]} : vector<2x128xf32> to vector<2x32xf32>
    %201 = math.tanh %200 : vector<2x32xf32>
    %202 = vector.extract_strided_slice %187 {offsets = [0, 96], sizes = [2, 32], strides = [1, 1]} : vector<2x128xf32> to vector<2x32xf32>
    %203 = arith.negf %202 : vector<2x32xf32>
    %204 = math.exp %203 : vector<2x32xf32>
    %cst_48 = arith.constant 1.000000e+00 : f32
    %205 = vector.broadcast %cst_48 : f32 to vector<2x32xf32>
    %206 = arith.addf %205, %204 : vector<2x32xf32>
    %207 = arith.divf %205, %206 : vector<2x32xf32>
    %208 = arith.mulf %199, %168 : vector<2x32xf32>
    %209 = arith.mulf %193, %201 : vector<2x32xf32>
    %210 = arith.addf %208, %209 : vector<2x32xf32>
    %211 = math.tanh %210 : vector<2x32xf32>
    %212 = arith.mulf %207, %211 : vector<2x32xf32>
    %213 = vector.broadcast %5 : vector<1x32xf32> to vector<2x32xf32>
    %214 = arith.mulf %212, %213 : vector<2x32xf32>
    %cst_49 = arith.constant dense<0.000000e+00> : vector<2xf32>
    %215 = vector.multi_reduction <add>, %214, %cst_49 [1] : vector<2x32xf32> to vector<2xf32>
    %216 = vector.shape_cast %215 : vector<2xf32> to vector<2x1xf32>
    %217 = vector.broadcast %6 : vector<1x1xf32> to vector<2x1xf32>
    %218 = arith.addf %216, %217 : vector<2x1xf32>
    %219 = vector.extract_strided_slice %0 {offsets = [0, 5, 0], sizes = [2, 1, 16], strides = [1, 1, 1]} : vector<2x8x16xf32> to vector<2x1x16xf32>
    %220 = vector.shape_cast %219 : vector<2x1x16xf32> to vector<2x16xf32>
    %cst_50 = arith.constant dense<0.000000e+00> : vector<2x32xf32>
    %221 = tpu.matmul %220, %1, %cst_50 {dimension_numbers = #tpu.dot_dimension_numbers<[1], [0], [0], [1], [0, 0, 1, 1], [], []>} : vector<2x16xf32>, vector<16x32xf32>, vector<2x32xf32> -> vector<2x32xf32>
    %222 = vector.broadcast %2 : vector<1x32xf32> to vector<2x32xf32>
    %223 = arith.addf %221, %222 : vector<2x32xf32>
    %cst_51 = arith.constant 0.000000e+00 : f32
    %224 = vector.broadcast %cst_51 : f32 to vector<2x32xf32>
    %225 = arith.maximumf %223, %224 : vector<2x32xf32>
    %226 = tpu.concatenate %225, %212 in 1 : vector<2x32xf32>, vector<2x32xf32> -> vector<2x64xf32>
    %cst_52 = arith.constant dense<0.000000e+00> : vector<2x128xf32>
    %227 = tpu.matmul %226, %3, %cst_52 {dimension_numbers = #tpu.dot_dimension_numbers<[1], [0], [0], [1], [0, 0, 1, 1], [], []>} : vector<2x64xf32>, vector<64x128xf32>, vector<2x128xf32> -> vector<2x128xf32>
    %228 = vector.broadcast %4 : vector<1x128xf32> to vector<2x128xf32>
    %229 = arith.addf %227, %228 : vector<2x128xf32>
    %230 = vector.extract_strided_slice %229 {offsets = [0, 0], sizes = [2, 32], strides = [1, 1]} : vector<2x128xf32> to vector<2x32xf32>
    %231 = arith.negf %230 : vector<2x32xf32>
    %232 = math.exp %231 : vector<2x32xf32>
    %cst_53 = arith.constant 1.000000e+00 : f32
    %233 = vector.broadcast %cst_53 : f32 to vector<2x32xf32>
    %234 = arith.addf %233, %232 : vector<2x32xf32>
    %235 = arith.divf %233, %234 : vector<2x32xf32>
    %236 = vector.extract_strided_slice %229 {offsets = [0, 32], sizes = [2, 32], strides = [1, 1]} : vector<2x128xf32> to vector<2x32xf32>
    %237 = arith.negf %236 : vector<2x32xf32>
    %238 = math.exp %237 : vector<2x32xf32>
    %cst_54 = arith.constant 1.000000e+00 : f32
    %239 = vector.broadcast %cst_54 : f32 to vector<2x32xf32>
    %240 = arith.addf %239, %238 : vector<2x32xf32>
    %241 = arith.divf %239, %240 : vector<2x32xf32>
    %242 = vector.extract_strided_slice %229 {offsets = [0, 64], sizes = [2, 32], strides = [1, 1]} : vector<2x128xf32> to vector<2x32xf32>
    %243 = math.tanh %242 : vector<2x32xf32>
    %244 = vector.extract_strided_slice %229 {offsets = [0, 96], sizes = [2, 32], strides = [1, 1]} : vector<2x128xf32> to vector<2x32xf32>
    %245 = arith.negf %244 : vector<2x32xf32>
    %246 = math.exp %245 : vector<2x32xf32>
    %cst_55 = arith.constant 1.000000e+00 : f32
    %247 = vector.broadcast %cst_55 : f32 to vector<2x32xf32>
    %248 = arith.addf %247, %246 : vector<2x32xf32>
    %249 = arith.divf %247, %248 : vector<2x32xf32>
    %250 = arith.mulf %241, %210 : vector<2x32xf32>
    %251 = arith.mulf %235, %243 : vector<2x32xf32>
    %252 = arith.addf %250, %251 : vector<2x32xf32>
    %253 = math.tanh %252 : vector<2x32xf32>
    %254 = arith.mulf %249, %253 : vector<2x32xf32>
    %255 = vector.broadcast %5 : vector<1x32xf32> to vector<2x32xf32>
    %256 = arith.mulf %254, %255 : vector<2x32xf32>
    %cst_56 = arith.constant dense<0.000000e+00> : vector<2xf32>
    %257 = vector.multi_reduction <add>, %256, %cst_56 [1] : vector<2x32xf32> to vector<2xf32>
    %258 = vector.shape_cast %257 : vector<2xf32> to vector<2x1xf32>
    %259 = vector.broadcast %6 : vector<1x1xf32> to vector<2x1xf32>
    %260 = arith.addf %258, %259 : vector<2x1xf32>
    %261 = vector.extract_strided_slice %0 {offsets = [0, 6, 0], sizes = [2, 1, 16], strides = [1, 1, 1]} : vector<2x8x16xf32> to vector<2x1x16xf32>
    %262 = vector.shape_cast %261 : vector<2x1x16xf32> to vector<2x16xf32>
    %cst_57 = arith.constant dense<0.000000e+00> : vector<2x32xf32>
    %263 = tpu.matmul %262, %1, %cst_57 {dimension_numbers = #tpu.dot_dimension_numbers<[1], [0], [0], [1], [0, 0, 1, 1], [], []>} : vector<2x16xf32>, vector<16x32xf32>, vector<2x32xf32> -> vector<2x32xf32>
    %264 = vector.broadcast %2 : vector<1x32xf32> to vector<2x32xf32>
    %265 = arith.addf %263, %264 : vector<2x32xf32>
    %cst_58 = arith.constant 0.000000e+00 : f32
    %266 = vector.broadcast %cst_58 : f32 to vector<2x32xf32>
    %267 = arith.maximumf %265, %266 : vector<2x32xf32>
    %268 = tpu.concatenate %267, %254 in 1 : vector<2x32xf32>, vector<2x32xf32> -> vector<2x64xf32>
    %cst_59 = arith.constant dense<0.000000e+00> : vector<2x128xf32>
    %269 = tpu.matmul %268, %3, %cst_59 {dimension_numbers = #tpu.dot_dimension_numbers<[1], [0], [0], [1], [0, 0, 1, 1], [], []>} : vector<2x64xf32>, vector<64x128xf32>, vector<2x128xf32> -> vector<2x128xf32>
    %270 = vector.broadcast %4 : vector<1x128xf32> to vector<2x128xf32>
    %271 = arith.addf %269, %270 : vector<2x128xf32>
    %272 = vector.extract_strided_slice %271 {offsets = [0, 0], sizes = [2, 32], strides = [1, 1]} : vector<2x128xf32> to vector<2x32xf32>
    %273 = arith.negf %272 : vector<2x32xf32>
    %274 = math.exp %273 : vector<2x32xf32>
    %cst_60 = arith.constant 1.000000e+00 : f32
    %275 = vector.broadcast %cst_60 : f32 to vector<2x32xf32>
    %276 = arith.addf %275, %274 : vector<2x32xf32>
    %277 = arith.divf %275, %276 : vector<2x32xf32>
    %278 = vector.extract_strided_slice %271 {offsets = [0, 32], sizes = [2, 32], strides = [1, 1]} : vector<2x128xf32> to vector<2x32xf32>
    %279 = arith.negf %278 : vector<2x32xf32>
    %280 = math.exp %279 : vector<2x32xf32>
    %cst_61 = arith.constant 1.000000e+00 : f32
    %281 = vector.broadcast %cst_61 : f32 to vector<2x32xf32>
    %282 = arith.addf %281, %280 : vector<2x32xf32>
    %283 = arith.divf %281, %282 : vector<2x32xf32>
    %284 = vector.extract_strided_slice %271 {offsets = [0, 64], sizes = [2, 32], strides = [1, 1]} : vector<2x128xf32> to vector<2x32xf32>
    %285 = math.tanh %284 : vector<2x32xf32>
    %286 = vector.extract_strided_slice %271 {offsets = [0, 96], sizes = [2, 32], strides = [1, 1]} : vector<2x128xf32> to vector<2x32xf32>
    %287 = arith.negf %286 : vector<2x32xf32>
    %288 = math.exp %287 : vector<2x32xf32>
    %cst_62 = arith.constant 1.000000e+00 : f32
    %289 = vector.broadcast %cst_62 : f32 to vector<2x32xf32>
    %290 = arith.addf %289, %288 : vector<2x32xf32>
    %291 = arith.divf %289, %290 : vector<2x32xf32>
    %292 = arith.mulf %283, %252 : vector<2x32xf32>
    %293 = arith.mulf %277, %285 : vector<2x32xf32>
    %294 = arith.addf %292, %293 : vector<2x32xf32>
    %295 = math.tanh %294 : vector<2x32xf32>
    %296 = arith.mulf %291, %295 : vector<2x32xf32>
    %297 = vector.broadcast %5 : vector<1x32xf32> to vector<2x32xf32>
    %298 = arith.mulf %296, %297 : vector<2x32xf32>
    %cst_63 = arith.constant dense<0.000000e+00> : vector<2xf32>
    %299 = vector.multi_reduction <add>, %298, %cst_63 [1] : vector<2x32xf32> to vector<2xf32>
    %300 = vector.shape_cast %299 : vector<2xf32> to vector<2x1xf32>
    %301 = vector.broadcast %6 : vector<1x1xf32> to vector<2x1xf32>
    %302 = arith.addf %300, %301 : vector<2x1xf32>
    %303 = vector.extract_strided_slice %0 {offsets = [0, 7, 0], sizes = [2, 1, 16], strides = [1, 1, 1]} : vector<2x8x16xf32> to vector<2x1x16xf32>
    %304 = vector.shape_cast %303 : vector<2x1x16xf32> to vector<2x16xf32>
    %cst_64 = arith.constant dense<0.000000e+00> : vector<2x32xf32>
    %305 = tpu.matmul %304, %1, %cst_64 {dimension_numbers = #tpu.dot_dimension_numbers<[1], [0], [0], [1], [0, 0, 1, 1], [], []>} : vector<2x16xf32>, vector<16x32xf32>, vector<2x32xf32> -> vector<2x32xf32>
    %306 = vector.broadcast %2 : vector<1x32xf32> to vector<2x32xf32>
    %307 = arith.addf %305, %306 : vector<2x32xf32>
    %cst_65 = arith.constant 0.000000e+00 : f32
    %308 = vector.broadcast %cst_65 : f32 to vector<2x32xf32>
    %309 = arith.maximumf %307, %308 : vector<2x32xf32>
    %310 = tpu.concatenate %309, %296 in 1 : vector<2x32xf32>, vector<2x32xf32> -> vector<2x64xf32>
    %cst_66 = arith.constant dense<0.000000e+00> : vector<2x128xf32>
    %311 = tpu.matmul %310, %3, %cst_66 {dimension_numbers = #tpu.dot_dimension_numbers<[1], [0], [0], [1], [0, 0, 1, 1], [], []>} : vector<2x64xf32>, vector<64x128xf32>, vector<2x128xf32> -> vector<2x128xf32>
    %312 = vector.broadcast %4 : vector<1x128xf32> to vector<2x128xf32>
    %313 = arith.addf %311, %312 : vector<2x128xf32>
    %314 = vector.extract_strided_slice %313 {offsets = [0, 0], sizes = [2, 32], strides = [1, 1]} : vector<2x128xf32> to vector<2x32xf32>
    %315 = arith.negf %314 : vector<2x32xf32>
    %316 = math.exp %315 : vector<2x32xf32>
    %cst_67 = arith.constant 1.000000e+00 : f32
    %317 = vector.broadcast %cst_67 : f32 to vector<2x32xf32>
    %318 = arith.addf %317, %316 : vector<2x32xf32>
    %319 = arith.divf %317, %318 : vector<2x32xf32>
    %320 = vector.extract_strided_slice %313 {offsets = [0, 32], sizes = [2, 32], strides = [1, 1]} : vector<2x128xf32> to vector<2x32xf32>
    %321 = arith.negf %320 : vector<2x32xf32>
    %322 = math.exp %321 : vector<2x32xf32>
    %cst_68 = arith.constant 1.000000e+00 : f32
    %323 = vector.broadcast %cst_68 : f32 to vector<2x32xf32>
    %324 = arith.addf %323, %322 : vector<2x32xf32>
    %325 = arith.divf %323, %324 : vector<2x32xf32>
    %326 = vector.extract_strided_slice %313 {offsets = [0, 64], sizes = [2, 32], strides = [1, 1]} : vector<2x128xf32> to vector<2x32xf32>
    %327 = math.tanh %326 : vector<2x32xf32>
    %328 = vector.extract_strided_slice %313 {offsets = [0, 96], sizes = [2, 32], strides = [1, 1]} : vector<2x128xf32> to vector<2x32xf32>
    %329 = arith.negf %328 : vector<2x32xf32>
    %330 = math.exp %329 : vector<2x32xf32>
    %cst_69 = arith.constant 1.000000e+00 : f32
    %331 = vector.broadcast %cst_69 : f32 to vector<2x32xf32>
    %332 = arith.addf %331, %330 : vector<2x32xf32>
    %333 = arith.divf %331, %332 : vector<2x32xf32>
    %334 = arith.mulf %325, %294 : vector<2x32xf32>
    %335 = arith.mulf %319, %327 : vector<2x32xf32>
    %336 = arith.addf %334, %335 : vector<2x32xf32>
    %337 = math.tanh %336 : vector<2x32xf32>
    %338 = arith.mulf %333, %337 : vector<2x32xf32>
    %339 = vector.broadcast %5 : vector<1x32xf32> to vector<2x32xf32>
    %340 = arith.mulf %338, %339 : vector<2x32xf32>
    %cst_70 = arith.constant dense<0.000000e+00> : vector<2xf32>
    %341 = vector.multi_reduction <add>, %340, %cst_70 [1] : vector<2x32xf32> to vector<2xf32>
    %342 = vector.shape_cast %341 : vector<2xf32> to vector<2x1xf32>
    %343 = vector.broadcast %6 : vector<1x1xf32> to vector<2x1xf32>
    %344 = arith.addf %342, %343 : vector<2x1xf32>
    %345 = tpu.concatenate %50, %92, %134, %176, %218, %260, %302, %344 in 1 : vector<2x1xf32>, vector<2x1xf32>, vector<2x1xf32>, vector<2x1xf32>, vector<2x1xf32>, vector<2x1xf32>, vector<2x1xf32>, vector<2x1xf32> -> vector<2x8xf32>
    %c0_71 = arith.constant 0 : index
    %c0_72 = arith.constant 0 : index
    %346 = vector.load %arg8[%c0_71, %c0_72] : memref<2x8xf32, #tpu.memory_space<vmem>>, vector<2x8xf32>
    tpu.vector_store %arg8[%c0_71, %c0_72], %345 {strides = array<i32>} : memref<2x8xf32, #tpu.memory_space<vmem>>, vector<2x8xf32>,
    %c0_73 = arith.constant 0 : index
    %c0_74 = arith.constant 0 : index
    %347 = vector.load %arg9[%c0_73, %c0_74] : memref<2x32xf32, #tpu.memory_space<vmem>>, vector<2x32xf32>
    tpu.vector_store %arg9[%c0_73, %c0_74], %338 {strides = array<i32>} : memref<2x32xf32, #tpu.memory_space<vmem>>, vector<2x32xf32>,
    %c0_75 = arith.constant 0 : index
    %c0_76 = arith.constant 0 : index
    %348 = vector.load %arg10[%c0_75, %c0_76] : memref<2x32xf32, #tpu.memory_space<vmem>>, vector<2x32xf32>
    tpu.vector_store %arg10[%c0_75, %c0_76], %336 {strides = array<i32>} : memref<2x32xf32, #tpu.memory_space<vmem>>, vector<2x32xf32>,
    return
  }
  func.func @transform_0(%arg0: i32) -> (i32, i32, i32) {
    %c0_i32 = arith.constant 0 : i32
    %c0_i32_0 = arith.constant 0 : i32
    %c0_i32_1 = arith.constant 0 : i32
    %c0_i32_2 = arith.constant 0 : i32
    return %c0_i32, %c0_i32_0, %c0_i32_1 : i32, i32, i32
  }
  func.func @transform_1(%arg0: i32) -> (i32, i32) {
    %c0_i32 = arith.constant 0 : i32
    %c0_i32_0 = arith.constant 0 : i32
    %c0_i32_1 = arith.constant 0 : i32
    return %c0_i32, %c0_i32_0 : i32, i32
  }
  func.func @transform_2(%arg0: i32) -> (i32, i32) {
    %c0_i32 = arith.constant 0 : i32
    %c0_i32_0 = arith.constant 0 : i32
    %c0_i32_1 = arith.constant 0 : i32
    return %c0_i32, %c0_i32_0 : i32, i32
  }
  func.func @transform_3(%arg0: i32) -> (i32, i32) {
    %c0_i32 = arith.constant 0 : i32
    %c0_i32_0 = arith.constant 0 : i32
    %c0_i32_1 = arith.constant 0 : i32
    return %c0_i32, %c0_i32_0 : i32, i32
  }
  func.func @transform_4(%arg0: i32) -> (i32, i32) {
    %c0_i32 = arith.constant 0 : i32
    %c0_i32_0 = arith.constant 0 : i32
    %c0_i32_1 = arith.constant 0 : i32
    return %c0_i32, %c0_i32_0 : i32, i32
  }
  func.func @transform_5(%arg0: i32) -> (i32, i32) {
    %c0_i32 = arith.constant 0 : i32
    %c0_i32_0 = arith.constant 0 : i32
    %c0_i32_1 = arith.constant 0 : i32
    return %c0_i32, %c0_i32_0 : i32, i32
  }
  func.func @transform_6(%arg0: i32) -> (i32, i32) {
    %c0_i32 = arith.constant 0 : i32
    %c0_i32_0 = arith.constant 0 : i32
    %c0_i32_1 = arith.constant 0 : i32
    return %c0_i32, %c0_i32_0 : i32, i32
  }
  func.func @transform_7(%arg0: i32) -> (i32, i32) {
    %c0_i32 = arith.constant 0 : i32
    %c0_i32_0 = arith.constant 0 : i32
    %c0_i32_1 = arith.constant 0 : i32
    return %c0_i32, %c0_i32_0 : i32, i32
  }
  func.func @transform_8(%arg0: i32) -> (i32, i32) {
    %c0_i32 = arith.constant 0 : i32
    %c0_i32_0 = arith.constant 0 : i32
    %c0_i32_1 = arith.constant 0 : i32
    return %c0_i32, %c0_i32_0 : i32, i32
  }
  func.func @transform_9(%arg0: i32) -> (i32, i32) {
    %c0_i32 = arith.constant 0 : i32
    %c0_i32_0 = arith.constant 0 : i32
    %c0_i32_1 = arith.constant 0 : i32
    return %c0_i32, %c0_i32_0 : i32, i32
  }
}

</mosaic_0001>

<bundles_post_ra>
// kernel: critic_forward.1
= control target key start
LH: loop header
LB: loop body
LE: loop exit
PB: predicated region body
PF: predicated region fallthrough
CT: control target
= control target key end

     0   :  { %s2842_s0 = inlined_call_operand.hbm [shape: f32[2,8,16], index: 0, kind: input, shape index: {}]   ;;  %s2843_s1 = inlined_call_operand.hbm [shape: f32[16,32], index: 1, kind: input, shape index: {}]   ;;  %s2844_s2 = inlined_call_operand.vmem [shape: f32[1,32], index: 2, kind: input, shape index: {}]   ;;  %s2845_s3 = inlined_call_operand.hbm [shape: f32[64,128], index: 3, kind: input, shape index: {}]   ;;  %s2846_s4 = inlined_call_operand.vmem [shape: f32[1,128], index: 4, kind: input, shape index: {}]   ;;  %s2847_s5 = inlined_call_operand.vmem [shape: f32[1,32], index: 5, kind: input, shape index: {}]   ;;  %s2848_s6 = inlined_call_operand.<no memory space> [shape: f32[1,1], index: 6, kind: input, shape index: {}]   ;;  %s2849_s7 = inlined_call_operand.hbm [shape: f32[2,8], index: 7, kind: output, shape index: {0}]   ;;  %s2850_s8 = inlined_call_operand.hbm [shape: f32[2,32], index: 8, kind: output, shape index: {1}]   ;;  %s2851_s9 = inlined_call_operand.hbm [shape: f32[2,32], index: 9, kind: output, shape index: {2}]  }
   0x1   :  { %v15_v0 = vstv %s2848_s6 }
   0x2   :  { %16 = vst [vmem:[#allocation2] sm:$0x1] %v15_v0 }
   0x3   :  { %17 = vsyncpa [#allocation4], 0 }
   0x4   :  { %18 = vsyncpa [#allocation7], 0 }
   0x5   :  { %19 = vsyncpa [#allocation5], 0 }
   0x6   :  { %20 = vsyncpa [#allocation11], 0  ;;  %s2387_s11 = smov [#allocation6]   ;;  %s2388_s13 = smov [#allocation3]  }
   0x7   :  { %s38_s12 = sshll.u32 %s2387_s11, 4  ;;  %s26_s14 = sshll.u32 %s2388_s13, 4  ;;  %s39_s12 = int_to_ptr.vmem [resolvable:$true] %s38_s12  ;;  %s2461_s14 = int_to_ptr.vmem [resolvable:$true] %s26_s14 }
   0x8   :  { %s2247_s17 = scalar_lea.hbm %s2843_s1, 256 }
   0x9   :  { %p2248_p0 = scmp.ne.s32.totalorder %s2843_s1, %s2247_s17  ;;  %p2251_p1 = scmp.lt.u32.totalorder %s2247_s17, %s2843_s1 }
   0xb   :  { %p2253_p2 = pnand %p2251_p1, %p2248_p0 }
   0xd   :  { %2256 = shalt.err (!%p2253_p2)
}
   0xe   :  { %s2257_s21 = scalar_lea.vmem %s39_s12, 256  ;;  %p2262_p4 = scmp.lt.s32.totalorder %s39_s12, %s39_s12 }
   0xf   :  { %p2258_p3 = scmp.ne.s32.totalorder %s39_s12, %s2257_s21  ;;  %p2263_p5 = scmp.lt.s32.totalorder %s2257_s21, %s2257_s21 }
  0x11   :  { %p2264_p6 = por %p2263_p5, %p2262_p4 }
  0x13   :  { %p2265_p7 = pnand %p2264_p6, %p2258_p3 }
  0x15   :  { %2268 = shalt.err (!%p2265_p7)
}
  0x16   :  { %s2389_s22 = smov 128   ;;  %s2390_s23 = smov 8  }
  0x17   :  { %44 = dma.hbm_to_vmem [thread:$0]  %s2843_s1, 256, %s39_s12, [#allocation7], %s2389_s22, %s2389_s22, %s2390_s23  }
  0x18   :  { %s2269_s28 = scalar_lea.hbm %s2842_s0, 256 }
  0x19   :  { %p2270_p8 = scmp.ne.s32.totalorder %s2842_s0, %s2269_s28  ;;  %p2273_p9 = scmp.lt.u32.totalorder %s2269_s28, %s2842_s0 }
  0x1b   :  { %p2275_p10 = pnand %p2273_p9, %p2270_p8 }
  0x1d   :  { %2278 = shalt.err (!%p2275_p10)
}
  0x1e   :  { %s2279_s13 = scalar_lea.vmem %s2461_s14, 256  ;;  %p2284_p12 = scmp.lt.s32.totalorder %s2461_s14, %s2461_s14 }
  0x1f   :  { %p2280_p11 = scmp.ne.s32.totalorder %s2461_s14, %s2279_s13  ;;  %p2285_p13 = scmp.lt.s32.totalorder %s2279_s13, %s2279_s13 }
  0x21   :  { %p2286_p0 = por %p2285_p13, %p2284_p12 }
  0x23   :  { %p2287_p1 = pnand %p2286_p0, %p2280_p11 }
  0x25   :  { %2290 = shalt.err (!%p2287_p1)
}
  0x26   :  { %32 = dma.hbm_to_vmem [thread:$0]  %s2842_s0, 256, %s2461_s14, [#allocation4], %s2389_s22, %s2389_s22, %s2390_s23  }
  0x27   :  { %s2391_s15 = smov [#allocation8]   ;;  %s2291_s19 = scalar_lea.hbm %s2845_s3, 1024 }
  0x28   :  { %s52_s16 = sshll.u32 %s2391_s15, 4  ;;  %p2292_p2 = scmp.ne.s32.totalorder %s2845_s3, %s2291_s19  ;;  %s53_s16 = int_to_ptr.vmem [resolvable:$true] %s52_s16 }
  0x29   :  { %p2295_p3 = scmp.lt.u32.totalorder %s2291_s19, %s2845_s3 }
  0x2b   :  { %p2297_p4 = pnand %p2295_p3, %p2292_p2 }
  0x2d   :  { %2300 = shalt.err (!%p2297_p4)
}
  0x2e   :  { %s2301_s25 = scalar_lea.vmem %s53_s16, 1024  ;;  %p2306_p6 = scmp.lt.s32.totalorder %s53_s16, %s53_s16 }
  0x2f   :  { %p2302_p5 = scmp.ne.s32.totalorder %s53_s16, %s2301_s25  ;;  %p2307_p7 = scmp.lt.s32.totalorder %s2301_s25, %s2301_s25 }
  0x31   :  { %p2308_p8 = por %p2307_p7, %p2306_p6 }
  0x33   :  { %p2309_p9 = pnand %p2308_p8, %p2302_p5 }
  0x35   :  { %2312 = shalt.err (!%p2309_p9)
}
  0x36   :  { %58 = dma.hbm_to_vmem [thread:$0]  %s2845_s3, 1024, %s53_s16, [#allocation7], %s2389_s22, %s2389_s22, %s2390_s23  }
  0x37   :  { %2379 = dma.done.wait [#allocation4], 256  }
  0x38   :  { %2380 = vsyncadd [#allocation4], 4294967040 }
  0x39   :  { %2381 = dma.done.wait [#allocation7], 1280  }
  0x3a   :  { %2382 = vsyncadd [#allocation7], 4294966016  ;;  %v2392_v1 = vmov 0.0|0.0   ;;  %vm2393_vm0 = vmmov 0   ;;  %v2394_v2 = vmov 0.0   ;;  %v76_v3 = vld [vmem:[#allocation6] sm:$0xff] }
  0x3b   :  { %2042 = vmatprep.subr.bf16.mxu1 %v2392_v1  ;;  %1838 = vmatprep.mubr.msk.f32.mxu1 %vm2393_vm0, %v2394_v2  ;;  %v77_v4 = vld [vmem:[#allocation6 + $0x8] sm:$0xff]  ;;  %v2519_v5 = vld [vmem:[#allocation3] sm:$0xff]  ;;  %v2523_v7 = vld [vmem:[#allocation3 + $0x8] sm:$0xff]  ;;  %vm99_vm1 = vcmask 1041409   ;;  %vm101_vm2 = vcmask 130048   ;;  %vm175_vm3 = vcmask 261120  }
  0x3c   :  { %2057 = vmatprep.subr.bf16.mxu0 %v2392_v1  ;;  %1864 = vmatprep.mubr.msk.f32.mxu0 %vm2393_vm0, %v2394_v2  ;;  %v2521_v6 = vpack.c.bf16 %v77_v4, %v76_v3  ;;  %v79_v8 = vld [vmem:[#allocation8] sm:$0xff]  ;;  %v80_v9 = vld [vmem:[#allocation8 + $0x8] sm:$0xff]  ;;  %v98_v10 = vrot.slane %v2523_v7, 7  ;;  %v81_v13 = vld [vmem:[#allocation8 + $0x10] sm:$0xff]  ;;  %vm183_vm4 = vcmask 523264   ;;  %s2395_s26 = smov 64  }
  0x3d   :  { %v2527_v11 = vpack.c.bf16 %v80_v9, %v79_v8  ;;  %v82_v14 = vld [vmem:[#allocation8 + $0x18] sm:$0xff]  ;;  %v83_v16 = vld [vmem:[#allocation8 + $0x20] sm:$0xff]  ;;  %v84_v17 = vld [vmem:[#allocation8 + $0x28] sm:$0xff]  ;;  %s2396_s27 = smov 32   ;;  %v305_v39 = vrot.slane %v2519_v5, 1  ;;  %v491_v63 = vrot.slane %v2519_v5, 2 }
  0x3e   :  { %2044 = vmatpush3.bf16.msra.mxu1 %v2521_v6  ;;  %2059 = vmatpush3.bf16.msra.mxu0 %v2521_v6  ;;  %v100_v12 = vsel %vm99_vm1, %v98_v10, %v2519_v5  ;;  %v2536_v15 = vpack.c.bf16 %v82_v14, %v81_v13  ;;  %v2542_v18 = vpack.c.bf16 %v84_v17, %v83_v16  ;;  %v85_v19 = vld [vmem:[#allocation8 + $0x30] sm:$0xff]  ;;  %v86_v20 = vld [vmem:[#allocation8 + $0x38] sm:$0xff]  ;;  %v492_v0 = vrot.slane %v2523_v7, 1  ;;  %s2397_s29 = smov 96   ;;  %s2399_s30 = smov 3  }
  0x3f   :  { %2045 = vmatprep.subr.bf16.mxu1 %v2392_v1  ;;  %2060 = vmatprep.subr.bf16.mxu0 %v2392_v1  ;;  %v2547_v21 = vpack.c.bf16 %v86_v20, %v85_v19  ;;  %v2554_v22 = vld [vmem:[%s2844_s2] ss:$0 sm:$0xff]  ;;  %v306_v40 = vsel %vm99_vm1, %v2523_v7, %v305_v39  ;;  %vm294_vm5 = vcmask 254976   ;;  %s2400_s10 = smov 2   ;;  %s2401_s11 = smov 4  }
  0x40   :  { %v2566_v28 = vld [vmem:[%s2846_s4] ss:$0 sm:$0xff]  ;;  %v493_v3 = vsel %vm99_vm1, %v492_v0, %v491_v63  ;;  %s2402_s13 = smov 5   ;;  %s2403_s1 = smov 6  }
  0x41   :  { %1839 = vmatmul.mubr.msk.f32.vlgmr.msra.gmra.mrb[0].mxu1 %vm101_vm2, %v100_v12  ;;  %1865 = vmatmul.mubr.msk.f32.vlgmr.msra.gmra.mrb[0].mxu0 %vm101_vm2, %v306_v40  ;;  %s2404_s12 = smov 7   ;;  %s2405_s15 = smov [#allocation10]  }
  0x42   :  { %2047 = vmatpush3.bf16.msra.mxu1 %v2527_v11  ;;  %1857 = vmatprep.mubr.msk.f32.mxu1 %vm2393_vm0, %v2394_v2  ;;  %s1683_s16 = sshll.u32 %s2405_s15, 4  ;;  %s1684_s16 = int_to_ptr.vmem [resolvable:$true] %s1683_s16 }
  0x43   :  { %2048 = vmatprep.subr.bf16.mxu1 %v2392_v1  ;;  %2062 = vmatpush3.bf16.msra.mxu0 %v2527_v11  ;;  %s2313_s17 = scalar_lea.vmem %s1684_s16, 32  ;;  %p2318_p11 = scmp.lt.s32.totalorder %s1684_s16, %s1684_s16 }
  0x44   :  { %1883 = vmatprep.mubr.msk.f32.mxu0 %vm2393_vm0, %v2394_v2  ;;  %2063 = vmatprep.subr.bf16.mxu0 %v2392_v1  ;;  %p2314_p10 = scmp.ne.s32.totalorder %s1684_s16, %s2313_s17  ;;  %p2319_p12 = scmp.lt.s32.totalorder %s2313_s17, %s2313_s17 }
  0x46   :  { %2050 = vmatpush3.bf16.msra.mxu1 %v2536_v15  ;;  %p2320_p13 = por %p2319_p12, %p2318_p11 }
  0x47   :  { %2051 = vmatprep.subr.bf16.mxu1 %v2392_v1  ;;  %2065 = vmatpush3.bf16.msra.mxu0 %v2536_v15 }
  0x48   :  { %2066 = vmatprep.subr.bf16.mxu0 %v2392_v1  ;;  %p2321_p0 = pnand %p2320_p13, %p2314_p10 }
  0x4a   :  { %2053 = vmatpush3.bf16.msra.mxu1 %v2542_v18 }
  0x4b   :  { %2054 = vmatprep.subr.bf16.mxu1 %v2392_v1  ;;  %2068 = vmatpush3.bf16.msra.mxu0 %v2542_v18 }
  0x4c   :  { %2069 = vmatprep.subr.bf16.mxu0 %v2392_v1 }
  0x4e   :  { %2056 = vmatpush3.bf16.msra.mxu1 %v2547_v21 }
  0x4f   :  { %2072 = vmatprep.subr.bf16.mxu1 %v2392_v1  ;;  %2071 = vmatpush3.bf16.msra.mxu0 %v2547_v21 }
  0x50   :  { %2087 = vmatprep.subr.bf16.mxu0 %v2392_v1 }
 0x114   :  { %v170_v23 = vpop.f32.mrb[0].mxu1  ;;  %v375_v45 = vpop.f32.mrb[0].mxu0 }
 0x115   :  { %v171_v24 = vadd.f32 %v2554_v22, %v170_v23  ;;  %v1840_v25 = vpop.f32.mrb[1].mxu1  ;;  %v1866_v46 = vpop.f32.mrb[1].mxu0  ;;  %v376_v49 = vadd.f32 %v2554_v22, %v375_v45 }
 0x117   :  { %v174_v26 = vmax.f32 %v171_v24, 0.0  ;;  %v379_v50 = vmax.f32 %v376_v49, 0.0 }
 0x119   :  { %v176_v27 = vsel %vm175_vm3, %v174_v26, 0.0 }
 0x11a   :  { %1858 = vmatmul.mubr.msk.f32.vlgmr.msra.gmra.mrb[2].mxu1 %vm183_vm4, %v176_v27 }
 0x11b   :  { %2074 = vmatpush3.bf16.msra.mxu1 %v2521_v6  ;;  %1890 = vmatprep.mubr.msk.f32.mxu1 %vm2393_vm0, %v2394_v2 }
 0x11c   :  { %2075 = vmatprep.subr.bf16.mxu1 %v2392_v1 }
 0x11e   :  { %1891 = vmatmul.mubr.msk.f32.vlgmr.msra.gmra.mrb[4].mxu1 %vm101_vm2, %v493_v3 }
 0x11f   :  { %2077 = vmatpush3.bf16.msra.mxu1 %v2527_v11  ;;  %1909 = vmatprep.mubr.msk.f32.mxu1 %vm2393_vm0, %v2394_v2 }
 0x120   :  { %2078 = vmatprep.subr.bf16.mxu1 %v2392_v1 }
 0x123   :  { %2080 = vmatpush3.bf16.msra.mxu1 %v2536_v15 }
 0x124   :  { %2081 = vmatprep.subr.bf16.mxu1 %v2392_v1 }
 0x127   :  { %2083 = vmatpush3.bf16.msra.mxu1 %v2542_v18 }
 0x128   :  { %2084 = vmatprep.subr.bf16.mxu1 %v2392_v1 }
 0x12b   :  { %2086 = vmatpush3.bf16.msra.mxu1 %v2547_v21 }
 0x12c   :  { %2102 = vmatprep.subr.bf16.mxu1 %v2392_v1 }
 0x1ed   :  { %v253_v29 = vpop.f32.mrb[2].mxu1 }
 0x1ee   :  { %v254_v30 = vadd.f32 %v2566_v28, %v253_v29  ;;  %v1859_v31 = vpop.f32.mrb[3].mxu1 }
 0x1f0   :  { %2183 = vtanh.f32 %v254_v30  ;;  %v1714_v33 = vmul.f32 -1.442695, %v254_v30 }
 0x1f1   :  { %v562_v12 = vpop.f32.mrb[4].mxu1 }
 0x1f2   :  { %2185 = vpow2.f32 %v1714_v33  ;;  %v1892_v13 = vpop.f32.mrb[5].mxu1  ;;  %v563_v17 = vadd.f32 %v2554_v22, %v562_v12 }
 0x1f4   :  { %v566_v19 = vmax.f32 %v563_v17, 0.0 }
 0x1fa   :  { %v2184_v32 = vpop.eup %2183 }
 0x1fb   :  { %266 = vrot.lane.b32.xlu0 %v2184_v32, %s2395_s26 }
 0x1fc   :  { %v2186_v34 = vpop.eup %2185 }
 0x1fd   :  { %v260_v35 = vadd.f32 1.0, %v2186_v34 }
 0x1ff   :  { %2187 = vrcp.f32 %v260_v35  ;;  %v678_v35 = vrot.slane %v2519_v5, 3 }
 0x209   :  { %v2188_v36 = vpop.eup %2187 }
 0x20a   :  { %v264_v41 = vmul.f32 0.0, %v2188_v36 }
 0x26d   :  { %v267_v37 = vpop.permute.xlu0 %266 }
 0x26e   :  { %v269_v38 = vmul.f32 %v2188_v36, %v267_v37 }
 0x270   :  { %271 = vrot.lane.b32.xlu0 %v269_v38, %s2396_s27 }
 0x2e2   :  { %v272_v42 = vpop.permute.xlu0 %271 }
 0x2e3   :  { %v274_v43 = vadd.f32 %v272_v42, %v264_v41 }
 0x2e5   :  { %2189 = vtanh.f32 %v274_v43 }
 0x2ef   :  { %v2190_v44 = vpop.eup %2189 }
 0x2f0   :  { %277 = vrot.lane.b32.xlu1 %v2190_v44, %s2395_s26 }
 0x362   :  { %v278_v47 = vpop.permute.xlu1 %277 }
 0x363   :  { %v2586_v48 = vmul.f32 %v2188_v36, %v278_v47  ;;  %v679_v36 = vrot.slane %v2523_v7, 2 }
 0x365   :  { %381 = vrot.lane.b32.xlu1 %v2586_v48, %s2395_s26  ;;  %v680_v37 = vsel %vm99_vm1, %v679_v36, %v678_v35  ;;  %v1053_v35 = vrot.slane %v2523_v7, 4 }
 0x3d7   :  { %v382_v51 = vpop.permute.xlu1 %381 }
 0x3d8   :  { %v384_v52 = vsel %vm175_vm3, %v379_v50, %v382_v51 }
 0x3d9   :  { %1884 = vmatmul.mubr.msk.f32.vlgmr.msra.gmra.mrb[2].mxu0 %vm183_vm4, %v384_v52 }
 0x3da   :  { %2089 = vmatpush3.bf16.msra.mxu0 %v2521_v6  ;;  %1916 = vmatprep.mubr.msk.f32.mxu0 %vm2393_vm0, %v2394_v2 }
 0x3db   :  { %2090 = vmatprep.subr.bf16.mxu0 %v2392_v1 }
 0x3dd   :  { %1917 = vmatmul.mubr.msk.f32.vlgmr.msra.gmra.mrb[4].mxu0 %vm101_vm2, %v680_v37 }
 0x3de   :  { %2092 = vmatpush3.bf16.msra.mxu0 %v2527_v11  ;;  %1935 = vmatprep.mubr.msk.f32.mxu0 %vm2393_vm0, %v2394_v2 }
 0x3df   :  { %2093 = vmatprep.subr.bf16.mxu0 %v2392_v1 }
 0x3e2   :  { %2095 = vmatpush3.bf16.msra.mxu0 %v2536_v15 }
 0x3e3   :  { %2096 = vmatprep.subr.bf16.mxu0 %v2392_v1 }
 0x3e6   :  { %2098 = vmatpush3.bf16.msra.mxu0 %v2542_v18 }
 0x3e7   :  { %2099 = vmatprep.subr.bf16.mxu0 %v2392_v1 }
 0x3ea   :  { %2101 = vmatpush3.bf16.msra.mxu0 %v2547_v21 }
 0x3eb   :  { %2117 = vmatprep.subr.bf16.mxu0 %v2392_v1 }
 0x4ac   :  { %v454_v53 = vpop.f32.mrb[2].mxu0 }
 0x4ad   :  { %v455_v54 = vadd.f32 %v2566_v28, %v454_v53  ;;  %v1885_v55 = vpop.f32.mrb[3].mxu0 }
 0x4af   :  { %2191 = vtanh.f32 %v455_v54  ;;  %v1719_v57 = vmul.f32 -1.442695, %v455_v54 }
 0x4b0   :  { %v749_v42 = vpop.f32.mrb[4].mxu0 }
 0x4b1   :  { %2193 = vpow2.f32 %v1719_v57  ;;  %v750_v46 = vadd.f32 %v2554_v22, %v749_v42 }
 0x4b3   :  { %v753_v47 = vmax.f32 %v750_v46, 0.0 }
 0x4b9   :  { %v2192_v56 = vpop.eup %2191 }
 0x4ba   :  { %467 = vrot.lane.b32.xlu0 %v2192_v56, %s2395_s26 }
 0x4bb   :  { %v2194_v58 = vpop.eup %2193 }
 0x4bc   :  { %v461_v59 = vadd.f32 1.0, %v2194_v58 }
 0x4be   :  { %2195 = vrcp.f32 %v461_v59 }
 0x4c8   :  { %v2196_v60 = vpop.eup %2195 }
 0x4c9   :  { %v465_v4 = vmul.f32 %v2196_v60, %v274_v43  ;;  %v1918_v43 = vpop.f32.mrb[5].mxu0 }
 0x52c   :  { %v468_v61 = vpop.permute.xlu0 %467 }
 0x52d   :  { %v470_v62 = vmul.f32 %v2196_v60, %v468_v61  ;;  %v865_v61 = vrot.slane %v2519_v5, 4 }
 0x52f   :  { %472 = vrot.lane.b32.xlu1 %v470_v62, %s2396_s27  ;;  %v866_v62 = vrot.slane %v2523_v7, 3 }
 0x531   :  { %v867_v63 = vsel %vm99_vm1, %v866_v62, %v865_v61  ;;  %v1240_v61 = vrot.slane %v2523_v7, 5 }
 0x5a1   :  { %v473_v8 = vpop.permute.xlu1 %472 }
 0x5a2   :  { %v475_v9 = vadd.f32 %v473_v8, %v465_v4 }
 0x5a4   :  { %2197 = vtanh.f32 %v475_v9 }
 0x5ae   :  { %v2198_v10 = vpop.eup %2197 }
 0x5af   :  { %478 = vrot.lane.b32.xlu0 %v2198_v10, %s2395_s26 }
 0x621   :  { %v479_v14 = vpop.permute.xlu0 %478 }
 0x622   :  { %v2615_v16 = vmul.f32 %v2196_v60, %v479_v14 }
 0x624   :  { %568 = vrot.lane.b32.xlu1 %v2615_v16, %s2395_s26 }
 0x696   :  { %v569_v20 = vpop.permute.xlu1 %568 }
 0x697   :  { %v571_v23 = vsel %vm175_vm3, %v566_v19, %v569_v20 }
 0x698   :  { %1910 = vmatmul.mubr.msk.f32.vlgmr.msra.gmra.mrb[6].mxu1 %vm183_vm4, %v571_v23 }
 0x699   :  { %2104 = vmatpush3.bf16.msra.mxu1 %v2521_v6  ;;  %1942 = vmatprep.mubr.msk.f32.mxu1 %vm2393_vm0, %v2394_v2 }
 0x69a   :  { %2105 = vmatprep.subr.bf16.mxu1 %v2392_v1 }
 0x69c   :  { %1943 = vmatmul.mubr.msk.f32.vlgmr.msra.gmra.mrb[8].mxu1 %vm101_vm2, %v867_v63 }
 0x69d   :  { %2107 = vmatpush3.bf16.msra.mxu1 %v2527_v11  ;;  %1961 = vmatprep.mubr.msk.f32.mxu1 %vm2393_vm0, %v2394_v2 }
 0x69e   :  { %2108 = vmatprep.subr.bf16.mxu1 %v2392_v1 }
 0x6a1   :  { %2110 = vmatpush3.bf16.msra.mxu1 %v2536_v15 }
 0x6a2   :  { %2111 = vmatprep.subr.bf16.mxu1 %v2392_v1 }
 0x6a5   :  { %2113 = vmatpush3.bf16.msra.mxu1 %v2542_v18 }
 0x6a6   :  { %2114 = vmatprep.subr.bf16.mxu1 %v2392_v1 }
 0x6a9   :  { %2116 = vmatpush3.bf16.msra.mxu1 %v2547_v21 }
 0x6aa   :  { %2132 = vmatprep.subr.bf16.mxu1 %v2392_v1 }
 0x76b   :  { %v641_v24 = vpop.f32.mrb[6].mxu1 }
 0x76c   :  { %v642_v25 = vadd.f32 %v2566_v28, %v641_v24  ;;  %v1911_v26 = vpop.f32.mrb[7].mxu1 }
 0x76e   :  { %2199 = vtanh.f32 %v642_v25  ;;  %v1722_v29 = vmul.f32 -1.442695, %v642_v25 }
 0x770   :  { %2201 = vpow2.f32 %v1722_v29 }
 0x778   :  { %v2200_v27 = vpop.eup %2199 }
 0x779   :  { %654 = vrot.lane.b32.xlu0 %v2200_v27, %s2395_s26 }
 0x77a   :  { %v2202_v30 = vpop.eup %2201 }
 0x77b   :  { %v648_v31 = vadd.f32 1.0, %v2202_v30 }
 0x77d   :  { %2203 = vrcp.f32 %v648_v31 }
 0x787   :  { %v2204_v32 = vpop.eup %2203 }
 0x788   :  { %v652_v38 = vmul.f32 %v2204_v32, %v475_v9  ;;  %v936_v9 = vpop.f32.mrb[8].mxu1 }
 0x789   :  { %v1944_v10 = vpop.f32.mrb[9].mxu1  ;;  %v937_v14 = vadd.f32 %v2554_v22, %v936_v9 }
 0x78b   :  { %v940_v17 = vmax.f32 %v937_v14, 0.0 }
 0x7eb   :  { %v655_v33 = vpop.permute.xlu0 %654 }
 0x7ec   :  { %v657_v34 = vmul.f32 %v2204_v32, %v655_v33 }
 0x7ee   :  { %659 = vrot.lane.b32.xlu1 %v657_v34, %s2396_s27  ;;  %v1052_v34 = vrot.slane %v2519_v5, 5 }
 0x7f0   :  { %v1054_v36 = vsel %vm99_vm1, %v1053_v35, %v1052_v34  ;;  %v1426_v34 = vrot.slane %v2519_v5, 7  ;;  %v1427_v35 = vrot.slane %v2523_v7, 6 }
 0x860   :  { %v660_v39 = vpop.permute.xlu1 %659 }
 0x861   :  { %v662_v40 = vadd.f32 %v660_v39, %v652_v38 }
 0x863   :  { %2205 = vtanh.f32 %v662_v40 }
 0x86d   :  { %v2206_v41 = vpop.eup %2205 }
 0x86e   :  { %665 = vrot.lane.b32.xlu0 %v2206_v41, %s2395_s26 }
 0x8e0   :  { %v666_v44 = vpop.permute.xlu0 %665 }
 0x8e1   :  { %v2644_v45 = vmul.f32 %v2204_v32, %v666_v44 }
 0x8e3   :  { %755 = vrot.lane.b32.xlu1 %v2644_v45, %s2395_s26 }
 0x955   :  { %v756_v49 = vpop.permute.xlu1 %755 }
 0x956   :  { %v758_v50 = vsel %vm175_vm3, %v753_v47, %v756_v49 }
 0x957   :  { %1936 = vmatmul.mubr.msk.f32.vlgmr.msra.gmra.mrb[6].mxu0 %vm183_vm4, %v758_v50 }
 0x958   :  { %2119 = vmatpush3.bf16.msra.mxu0 %v2521_v6  ;;  %1968 = vmatprep.mubr.msk.f32.mxu0 %vm2393_vm0, %v2394_v2 }
 0x959   :  { %2120 = vmatprep.subr.bf16.mxu0 %v2392_v1 }
 0x95b   :  { %1969 = vmatmul.mubr.msk.f32.vlgmr.msra.gmra.mrb[8].mxu0 %vm101_vm2, %v1054_v36  ;;  %v1428_v36 = vsel %vm99_vm1, %v1427_v35, %v1426_v34 }
 0x95c   :  { %2122 = vmatpush3.bf16.msra.mxu0 %v2527_v11  ;;  %1987 = vmatprep.mubr.msk.f32.mxu0 %vm2393_vm0, %v2394_v2 }
 0x95d   :  { %2123 = vmatprep.subr.bf16.mxu0 %v2392_v1 }
 0x960   :  { %2125 = vmatpush3.bf16.msra.mxu0 %v2536_v15 }
 0x961   :  { %2126 = vmatprep.subr.bf16.mxu0 %v2392_v1 }
 0x964   :  { %2128 = vmatpush3.bf16.msra.mxu0 %v2542_v18 }
 0x965   :  { %2129 = vmatprep.subr.bf16.mxu0 %v2392_v1 }
 0x968   :  { %2131 = vmatpush3.bf16.msra.mxu0 %v2547_v21 }
 0x969   :  { %2147 = vmatprep.subr.bf16.mxu0 %v2392_v1 }
 0xa2a   :  { %v828_v51 = vpop.f32.mrb[6].mxu0 }
 0xa2b   :  { %v829_v52 = vadd.f32 %v2566_v28, %v828_v51  ;;  %v1937_v53 = vpop.f32.mrb[7].mxu0 }
 0xa2d   :  { %2207 = vtanh.f32 %v829_v52  ;;  %v1725_v55 = vmul.f32 -1.442695, %v829_v52 }
 0xa2e   :  { %v1123_v41 = vpop.f32.mrb[8].mxu0 }
 0xa2f   :  { %2209 = vpow2.f32 %v1725_v55  ;;  %v1970_v42 = vpop.f32.mrb[9].mxu0  ;;  %v1124_v46 = vadd.f32 %v2554_v22, %v1123_v41 }
 0xa31   :  { %v1127_v47 = vmax.f32 %v1124_v46, 0.0 }
 0xa37   :  { %v2208_v54 = vpop.eup %2207 }
 0xa38   :  { %841 = vrot.lane.b32.xlu0 %v2208_v54, %s2395_s26 }
 0xa39   :  { %v2210_v56 = vpop.eup %2209 }
 0xa3a   :  { %v835_v57 = vadd.f32 1.0, %v2210_v56 }
 0xa3c   :  { %2211 = vrcp.f32 %v835_v57 }
 0xa46   :  { %v2212_v58 = vpop.eup %2211 }
 0xa47   :  { %v839_v0 = vmul.f32 %v2212_v58, %v662_v40 }
 0xaaa   :  { %v842_v59 = vpop.permute.xlu0 %841 }
 0xaab   :  { %v844_v60 = vmul.f32 %v2212_v58, %v842_v59 }
 0xaad   :  { %846 = vrot.lane.b32.xlu1 %v844_v60, %s2396_s27  ;;  %v1239_v60 = vrot.slane %v2519_v5, 6 }
 0xaaf   :  { %v1241_v62 = vsel %vm99_vm1, %v1240_v61, %v1239_v60 }
 0xb1f   :  { %v847_v3 = vpop.permute.xlu1 %846 }
 0xb20   :  { %v849_v4 = vadd.f32 %v847_v3, %v839_v0 }
 0xb22   :  { %2213 = vtanh.f32 %v849_v4 }
 0xb2c   :  { %v2214_v8 = vpop.eup %2213 }
 0xb2d   :  { %852 = vrot.lane.b32.xlu0 %v2214_v8, %s2395_s26 }
 0xb9f   :  { %v853_v12 = vpop.permute.xlu0 %852 }
 0xba0   :  { %v2673_v13 = vmul.f32 %v2212_v58, %v853_v12 }
 0xba2   :  { %942 = vrot.lane.b32.xlu1 %v2673_v13, %s2395_s26 }
 0xc14   :  { %v943_v19 = vpop.permute.xlu1 %942 }
 0xc15   :  { %v945_v20 = vsel %vm175_vm3, %v940_v17, %v943_v19 }
 0xc16   :  { %1962 = vmatmul.mubr.msk.f32.vlgmr.msra.gmra.mrb[10].mxu1 %vm183_vm4, %v945_v20 }
 0xc17   :  { %2134 = vmatpush3.bf16.msra.mxu1 %v2521_v6  ;;  %1994 = vmatprep.mubr.msk.f32.mxu1 %vm2393_vm0, %v2394_v2 }
 0xc18   :  { %2135 = vmatprep.subr.bf16.mxu1 %v2392_v1 }
 0xc1a   :  { %1995 = vmatmul.mubr.msk.f32.vlgmr.msra.gmra.mrb[12].mxu1 %vm101_vm2, %v1241_v62 }
 0xc1b   :  { %2137 = vmatpush3.bf16.msra.mxu1 %v2527_v11  ;;  %2013 = vmatprep.mubr.msk.f32.mxu1 %vm2393_vm0, %v2394_v2 }
 0xc1c   :  { %2138 = vmatprep.subr.bf16.mxu1 %v2392_v1 }
 0xc1f   :  { %2140 = vmatpush3.bf16.msra.mxu1 %v2536_v15 }
 0xc20   :  { %2141 = vmatprep.subr.bf16.mxu1 %v2392_v1 }
 0xc23   :  { %2143 = vmatpush3.bf16.msra.mxu1 %v2542_v18 }
 0xc24   :  { %2144 = vmatprep.subr.bf16.mxu1 %v2392_v1 }
 0xc27   :  { %2146 = vmatpush3.bf16.msra.mxu1 %v2547_v21 }
 0xce9   :  { %v1015_v23 = vpop.f32.mrb[10].mxu1 }
 0xcea   :  { %v1016_v24 = vadd.f32 %v2566_v28, %v1015_v23  ;;  %v1963_v25 = vpop.f32.mrb[11].mxu1 }
 0xcec   :  { %2215 = vtanh.f32 %v1016_v24  ;;  %v1728_v27 = vmul.f32 -1.442695, %v1016_v24 }
 0xced   :  { %v1310_v8 = vpop.f32.mrb[12].mxu1 }
 0xcee   :  { %2217 = vpow2.f32 %v1728_v27  ;;  %v1996_v9 = vpop.f32.mrb[13].mxu1  ;;  %v1311_v14 = vadd.f32 %v2554_v22, %v1310_v8 }
 0xcf0   :  { %v1314_v17 = vmax.f32 %v1311_v14, 0.0 }
 0xcf6   :  { %v2216_v26 = vpop.eup %2215 }
 0xcf7   :  { %1028 = vrot.lane.b32.xlu0 %v2216_v26, %s2395_s26 }
 0xcf8   :  { %v2218_v29 = vpop.eup %2217 }
 0xcf9   :  { %v1022_v30 = vadd.f32 1.0, %v2218_v29 }
 0xcfb   :  { %2219 = vrcp.f32 %v1022_v30 }
 0xd05   :  { %v2220_v31 = vpop.eup %2219 }
 0xd06   :  { %v1026_v37 = vmul.f32 %v2220_v31, %v849_v4 }
 0xd69   :  { %v1029_v32 = vpop.permute.xlu0 %1028 }
 0xd6a   :  { %v1031_v33 = vmul.f32 %v2220_v31, %v1029_v32 }
 0xd6c   :  { %1033 = vrot.lane.b32.xlu1 %v1031_v33, %s2396_s27 }
 0xdde   :  { %v1034_v38 = vpop.permute.xlu1 %1033 }
 0xddf   :  { %v1036_v39 = vadd.f32 %v1034_v38, %v1026_v37 }
 0xde1   :  { %2221 = vtanh.f32 %v1036_v39 }
 0xdeb   :  { %v2222_v40 = vpop.eup %2221 }
 0xdec   :  { %1039 = vrot.lane.b32.xlu0 %v2222_v40, %s2395_s26 }
 0xe5e   :  { %v1040_v43 = vpop.permute.xlu0 %1039 }
 0xe5f   :  { %v2702_v44 = vmul.f32 %v2220_v31, %v1040_v43 }
 0xe61   :  { %1129 = vrot.lane.b32.xlu1 %v2702_v44, %s2395_s26 }
 0xed3   :  { %v1130_v49 = vpop.permute.xlu1 %1129 }
 0xed4   :  { %v1132_v50 = vsel %vm175_vm3, %v1127_v47, %v1130_v49  ;;  %v1715_v47 = vld [vmem:[%s2847_s5] ss:$0 sm:$0xff]  ;;  %s2398_s5 = smov 1  }
 0xed5   :  { %1988 = vmatmul.mubr.msk.f32.vlgmr.msra.gmra.mrb[10].mxu0 %vm183_vm4, %v1132_v50 }
 0xed6   :  { %2149 = vmatpush3.bf16.msra.mxu0 %v2521_v6  ;;  %2020 = vmatprep.mubr.msk.f32.mxu0 %vm2393_vm0, %v2394_v2 }
 0xed7   :  { %2150 = vmatprep.subr.bf16.mxu0 %v2392_v1 }
 0xed9   :  { %2021 = vmatmul.mubr.msk.f32.vlgmr.msra.gmra.mrb[12].mxu0 %vm101_vm2, %v1428_v36 }
 0xeda   :  { %2152 = vmatpush3.bf16.msra.mxu0 %v2527_v11  ;;  %2039 = vmatprep.mubr.msk.f32.mxu0 %vm2393_vm0, %v2394_v2 }
 0xedb   :  { %2153 = vmatprep.subr.bf16.mxu0 %v2392_v1 }
 0xede   :  { %2155 = vmatpush3.bf16.msra.mxu0 %v2536_v15 }
 0xedf   :  { %2156 = vmatprep.subr.bf16.mxu0 %v2392_v1 }
 0xee2   :  { %2158 = vmatpush3.bf16.msra.mxu0 %v2542_v18 }
 0xee3   :  { %2159 = vmatprep.subr.bf16.mxu0 %v2392_v1 }
 0xee6   :  { %2161 = vmatpush3.bf16.msra.mxu0 %v2547_v21 }
 0xfa8   :  { %v1202_v51 = vpop.f32.mrb[10].mxu0 }
 0xfa9   :  { %v1203_v52 = vadd.f32 %v2566_v28, %v1202_v51  ;;  %v1989_v53 = vpop.f32.mrb[11].mxu0 }
 0xfab   :  { %2223 = vtanh.f32 %v1203_v52  ;;  %v1731_v55 = vmul.f32 -1.442695, %v1203_v52 }
 0xfac   :  { %v1497_v2 = vpop.f32.mrb[12].mxu0 }
 0xfad   :  { %2225 = vpow2.f32 %v1731_v55  ;;  %v2022_v38 = vpop.f32.mrb[13].mxu0  ;;  %v1498_v15 = vadd.f32 %v2554_v22, %v1497_v2 }
 0xfaf   :  { %v1501_v18 = vmax.f32 %v1498_v15, 0.0 }
 0xfb5   :  { %v2224_v54 = vpop.eup %2223 }
 0xfb6   :  { %1215 = vrot.lane.b32.xlu0 %v2224_v54, %s2395_s26 }
 0xfb7   :  { %v2226_v56 = vpop.eup %2225 }
 0xfb8   :  { %v1209_v57 = vadd.f32 1.0, %v2226_v56 }
 0xfba   :  { %2227 = vrcp.f32 %v1209_v57 }
 0xfc4   :  { %v2228_v58 = vpop.eup %2227 }
 0xfc5   :  { %v1213_v63 = vmul.f32 %v2228_v58, %v1036_v39 }
0x1028   :  { %v1216_v6 = vpop.permute.xlu0 %1215 }
0x1029   :  { %v1218_v59 = vmul.f32 %v2228_v58, %v1216_v6 }
0x102b   :  { %1220 = vrot.lane.b32.xlu1 %v1218_v59, %s2396_s27 }
0x109d   :  { %v1221_v0 = vpop.permute.xlu1 %1220 }
0x109e   :  { %v1223_v3 = vadd.f32 %v1221_v0, %v1213_v63 }
0x10a0   :  { %2229 = vtanh.f32 %v1223_v3 }
0x10aa   :  { %v2230_v4 = vpop.eup %2229 }
0x10ab   :  { %1226 = vrot.lane.b32.xlu0 %v2230_v4, %s2395_s26 }
0x111d   :  { %v1227_v10 = vpop.permute.xlu0 %1226 }
0x111e   :  { %v2730_v12 = vmul.f32 %v2228_v58, %v1227_v10 }
0x1120   :  { %1316 = vrot.lane.b32.xlu1 %v2730_v12, %s2395_s26 }
0x1192   :  { %v1317_v19 = vpop.permute.xlu1 %1316 }
0x1193   :  { %v1319_v20 = vsel %vm175_vm3, %v1314_v17, %v1317_v19 }
0x1194   :  { %2014 = vmatmul.mubr.msk.f32.vlgmr.msra.gmra.mrb[14].mxu1 %vm183_vm4, %v1319_v20 }
0x1267   :  { %v1389_v23 = vpop.f32.mrb[14].mxu1 }
0x1268   :  { %v1390_v24 = vadd.f32 %v2566_v28, %v1389_v23  ;;  %v2015_v25 = vpop.f32.mrb[15].mxu1 }
0x126a   :  { %2231 = vtanh.f32 %v1390_v24  ;;  %v1734_v27 = vmul.f32 -1.442695, %v1390_v24 }
0x126c   :  { %2233 = vpow2.f32 %v1734_v27 }
0x1274   :  { %v2232_v26 = vpop.eup %2231 }
0x1275   :  { %1402 = vrot.lane.b32.xlu0 %v2232_v26, %s2395_s26 }
0x1276   :  { %v2234_v29 = vpop.eup %2233 }
0x1277   :  { %v1396_v30 = vadd.f32 1.0, %v2234_v29 }
0x1279   :  { %2235 = vrcp.f32 %v1396_v30 }
0x1283   :  { %v2236_v31 = vpop.eup %2235 }
0x1284   :  { %v1400_v5 = vmul.f32 %v2236_v31, %v1223_v3 }
0x12e7   :  { %v1403_v32 = vpop.permute.xlu0 %1402 }
0x12e8   :  { %v1405_v33 = vmul.f32 %v2236_v31, %v1403_v32 }
0x12ea   :  { %1407 = vrot.lane.b32.xlu1 %v1405_v33, %s2396_s27 }
0x135c   :  { %v1408_v7 = vpop.permute.xlu1 %1407 }
0x135d   :  { %v1410_v37 = vadd.f32 %v1408_v7, %v1400_v5 }
0x135f   :  { %2237 = vtanh.f32 %v1410_v37 }
0x1369   :  { %v2238_v11 = vpop.eup %2237 }
0x136a   :  { %1413 = vrot.lane.b32.xlu0 %v2238_v11, %s2395_s26 }
0x13dc   :  { %v1414_v39 = vpop.permute.xlu0 %1413 }
0x13dd   :  { %v1416_v40 = vmul.f32 %v2236_v31, %v1414_v39 }
0x13df   :  { %1503 = vrot.lane.b32.xlu1 %v1416_v40, %s2395_s26 }
0x1451   :  { %v1504_v41 = vpop.permute.xlu1 %1503 }
0x1452   :  { %v1506_v1 = vsel %vm175_vm3, %v1501_v18, %v1504_v41 }
0x1453   :  { %2040 = vmatmul.mubr.msk.f32.vlgmr.msra.gmra.mrb[14].mxu0 %vm183_vm4, %v1506_v1 }
0x1526   :  { %v1576_v21 = vpop.f32.mrb[14].mxu0 }
0x1527   :  { %v1577_v42 = vadd.f32 %v2566_v28, %v1576_v21  ;;  %v2041_v43 = vpop.f32.mrb[15].mxu0 }
0x1529   :  { %2239 = vtanh.f32 %v1577_v42  ;;  %v1737_v22 = vmul.f32 -1.442695, %v1577_v42 }
0x152b   :  { %2241 = vpow2.f32 %v1737_v22 }
0x1533   :  { %v2240_v46 = vpop.eup %2239 }
0x1534   :  { %1589 = vrot.lane.b32.xlu0 %v2240_v46, %s2395_s26 }
0x1535   :  { %v2242_v49 = vpop.eup %2241 }
0x1536   :  { %v1583_v50 = vadd.f32 1.0, %v2242_v49 }
0x1538   :  { %286 = vrot.lane.b32.xlu0 %v1715_v47, %s2397_s29  ;;  %2243 = vrcp.f32 %v1583_v50 }
0x1542   :  { %v2244_v51 = vpop.eup %2243 }
0x1543   :  { %v1587_v56 = vmul.f32 %v2244_v51, %v1410_v37 }
0x15a6   :  { %v1590_v52 = vpop.permute.xlu0 %1589 }
0x15a7   :  { %v1592_v28 = vmul.f32 %v2244_v51, %v1590_v52 }
0x15a9   :  { %1594 = vrot.lane.b32.xlu1 %v1592_v28, %s2396_s27 }
0x15aa   :  { %v287_v53 = vpop.permute.xlu0 %286 }
0x15ab   :  { %v289_v54 = vmul.f32 %v287_v53, %v2586_v48  ;;  %v482_v55 = vmul.f32 %v2615_v16, %v287_v53  ;;  %v856_v48 = vmul.f32 %v2673_v13, %v287_v53  ;;  %v1417_v16 = vmul.f32 %v1416_v40, %v287_v53 }
0x15ac   :  { %v669_v63 = vmul.f32 %v2644_v45, %v287_v53  ;;  %v1043_v0 = vmul.f32 %v2702_v44, %v287_v53  ;;  %v1230_v3 = vmul.f32 %v2730_v12, %v287_v53  ;;  %v2787_v44 = vld [vmem:[#allocation2] ss:$0 sm:$0xff] }
0x15ad   :  { %291 = vrot.lane.b32.xlu0 %v289_v54, %s2396_s27 }
0x15b1   :  { %484 = vrot.lane.b32.xlu0 %v482_v55, %s2396_s27 }
0x161b   :  { %v1595_v57 = vpop.permute.xlu1 %1594 }
0x161c   :  { %v2769_v58 = vadd.f32 %v1595_v57, %v1587_v56 }
0x161e   :  { %2245 = vtanh.f32 %v2769_v58 }
0x161f   :  { %v292_v6 = vpop.permute.xlu0 %291 }
0x1620   :  { %v295_v62 = vsel %vm294_vm5, %v292_v6, 0.0 }
0x1623   :  { %v485_v59 = vpop.permute.xlu0 %484 }
0x1624   :  { %v487_v60 = vsel %vm294_vm5, %v485_v59, 0.0 }
0x1625   :  { %488 = vadd.xlane.f32.xlu0 %v487_v60 }
0x1628   :  { %v2246_v61 = vpop.eup %2245 }
0x1629   :  { %1600 = vrot.lane.b32.xlu1 %v2246_v61, %s2395_s26 }
0x163b   :  { %858 = vrot.lane.b32.xlu0 %v856_v48, %s2396_s27 }
0x163f   :  { %1419 = vrot.lane.b32.xlu0 %v1417_v16, %s2396_s27 }
0x164d   :  { %296 = vadd.xlane.f32.xlu1 %v295_v62 }
0x165e   :  { %671 = vrot.lane.b32.xlu1 %v669_v63, %s2396_s27 }
0x1662   :  { %1045 = vrot.lane.b32.xlu1 %v1043_v0, %s2396_s27 }
0x1666   :  { %1232 = vrot.lane.b32.xlu1 %v1230_v3, %s2396_s27 }
0x169b   :  { %v1601_v13 = vpop.permute.xlu1 %1600 }
0x169c   :  { %v1603_v4 = vmul.f32 %v2244_v51, %v1601_v13 }
0x169e   :  { %v1604_v8 = vmul.f32 %v1603_v4, %v287_v53 }
0x16a0   :  { %1606 = vrot.lane.b32.xlu1 %v1604_v8, %s2396_s27 }
0x16b2   :  { %v489_v9 = vpop.xlane.xlu0 %488 }
0x16b3   :  { %v490_v12 = vadd.f32 %v2787_v44, %v489_v9 }
0x16b6   :  { %v859_v10 = vpop.permute.xlu0 %858 }
0x16b7   :  { %v861_v14 = vsel %vm294_vm5, %v859_v10, 0.0 }
0x16ba   :  { %v1420_v45 = vpop.permute.xlu0 %1419 }
0x16bb   :  { %v1422_v17 = vsel %vm294_vm5, %v1420_v45, 0.0 }
0x16c4   :  { %862 = vadd.xlane.f32.xlu1 %v861_v14 }
0x16c8   :  { %1423 = vadd.xlane.f32.xlu1 %v1422_v17 }
0x16d9   :  { %1614 = vrot.lane.b32.xlu1 %v490_v12, %s2398_s5 }
0x16da   :  { %v297_v19 = vpop.xlane.xlu1 %296 }
0x16de   :  { %v672_v20 = vpop.permute.xlu1 %671 }
0x16df   :  { %v674_v23 = vsel %vm294_vm5, %v672_v20, 0.0 }
0x16e0   :  { %675 = vadd.xlane.f32.xlu0 %v674_v23 }
0x16e2   :  { %v1046_v24 = vpop.permute.xlu1 %1045 }
0x16e3   :  { %v1048_v25 = vsel %vm294_vm5, %v1046_v24, 0.0 }
0x16e4   :  { %1049 = vadd.xlane.f32.xlu0 %v1048_v25 }
0x16e6   :  { %v1233_v26 = vpop.permute.xlu1 %1232 }
0x16e7   :  { %v1235_v27 = vsel %vm294_vm5, %v1233_v26, 0.0 }
0x16e8   :  { %1236 = vadd.xlane.f32.xlu0 %v1235_v27 }
0x1712   :  { %v1607_v29 = vpop.permute.xlu1 %1606 }
0x1713   :  { %v1609_v30 = vsel %vm294_vm5, %v1607_v29, 0.0 }
0x1714   :  { %1610 = vadd.xlane.f32.xlu0 %v1609_v30 }
0x1751   :  { %v863_v31 = vpop.xlane.xlu1 %862 }
0x1752   :  { %v864_v32 = vadd.f32 %v2787_v44, %v863_v31 }
0x1754   :  { %1622 = vrot.lane.b32.xlu1 %v864_v32, %s2399_s30 }
0x1755   :  { %v1424_v5 = vpop.xlane.xlu1 %1423 }
0x1756   :  { %v1425_v37 = vadd.f32 %v2787_v44, %v1424_v5 }
0x1759   :  { %v1615_v39 = vpop.permute.xlu1 %1614 }
0x176d   :  { %v676_v33 = vpop.xlane.xlu0 %675 }
0x176e   :  { %v677_v34 = vadd.f32 %v2787_v44, %v676_v33 }
0x1770   :  { %1618 = vrot.lane.b32.xlu0 %v677_v34, %s2400_s10 }
0x1771   :  { %v1050_v35 = vpop.xlane.xlu0 %1049 }
0x1772   :  { %v1051_v36 = vadd.f32 %v2787_v44, %v1050_v35 }
0x1774   :  { %1626 = vrot.lane.b32.xlu1 %v1051_v36, %s2401_s11 }
0x1775   :  { %v1237_v7 = vpop.xlane.xlu0 %1236 }
0x1776   :  { %v1238_v11 = vadd.f32 %v2787_v44, %v1237_v7 }
0x1778   :  { %1630 = vrot.lane.b32.xlu0 %v1238_v11, %s2402_s13  ;;  %1634 = vrot.lane.b32.xlu1 %v1425_v37, %s2403_s1 }
0x177c   :  { %1658 = vrot.lane.b32.xlu1 %v1603_v4, %s2396_s27 }
0x17a1   :  { %v1611_v2 = vpop.xlane.xlu0 %1610 }
0x17a2   :  { %v1612_v38 = vadd.f32 %v2787_v44, %v1611_v2 }
0x17a4   :  { %1638 = vrot.lane.b32.xlu0 %v1612_v38, %s2404_s12 }
0x17a8   :  { %1663 = vrot.lane.b32.xlu0 %v2769_v58, %s2397_s29 }
0x17c6   :  { %v1623_v40 = vpop.permute.xlu1 %1622 }
0x17e6   :  { %v1627_v15 = vpop.permute.xlu1 %1626 }
0x17ea   :  { %v1635_v18 = vpop.permute.xlu1 %1634 }
0x17ee   :  { %v1659_v41 = vpop.permute.xlu1 %1658 }
0x17ef   :  { %1661 = vst.msk [vmem:[#allocation10] sm:$0x3] %vm294_vm5, %v1659_v41 }
0x17f0   :  { %2324 = shalt.err (!%p2321_p0)
}
0x17f1   :  { %s2325_s6 = scalar_lea.hbm %s2850_s8, 32 }
0x17f2   :  { %p2326_p1 = scmp.ne.s32.totalorder %s2850_s8, %s2325_s6  ;;  %p2329_p2 = scmp.lt.u32.totalorder %s2325_s6, %s2850_s8 }
0x17f4   :  { %p2331_p3 = pnand %p2329_p2, %p2326_p1 }
0x17f6   :  { %2334 = shalt.err (!%p2331_p3)
}
0x17f7   :  { %1686 = dma.vmem_to_hbm [thread:$0]  %s1684_s16, 32, %s2850_s8, [#allocation11]   ;;  %vm1641_vm6 = vcmask 7168   ;;  %v304_v1 = vadd.f32 %v2787_v44, %v297_v19  ;;  %vm1643_vm7 = vcmask 15360   ;;  %v1619_v21 = vpop.permute.xlu0 %1618  ;;  %vm1645_vm8 = vcmask 23552  }
0x17f8   :  { %vm1647_vm9 = vcmask 31744   ;;  %vm1649_vm10 = vcmask 39936   ;;  %vm1651_vm11 = vcmask 48128   ;;  %s2406_s3 = smov [#allocation9]   ;;  %vm1653_vm12 = vcmask 56320   ;;  %s2407_s8 = smov [#allocation12]  }
0x17f9   :  { %v1642_v42 = vsel %vm1641_vm6, %v304_v1, %v1615_v39  ;;  %s1673_s22 = sshll.u32 %s2406_s3, 4  ;;  %vm1655_vm13 = vcmask 58368   ;;  %s1693_s2 = sshll.u32 %s2407_s8, 4  ;;  %s1674_s22 = int_to_ptr.vmem [resolvable:$true] %s1673_s22  ;;  %s1694_s2 = int_to_ptr.vmem [resolvable:$true] %s1693_s2 }
0x17fa   :  { %v1644_v43 = vsel %vm1643_vm7, %v1642_v42, %v1619_v21  ;;  %s2335_s23 = scalar_lea.vmem %s1674_s22, 32  ;;  %p2340_p5 = scmp.lt.s32.totalorder %s1674_s22, %s1674_s22 }
0x17fb   :  { %v1631_v46 = vpop.permute.xlu0 %1630  ;;  %v1646_v47 = vsel %vm1645_vm8, %v1644_v43, %v1623_v40  ;;  %p2336_p4 = scmp.ne.s32.totalorder %s1674_s22, %s2335_s23  ;;  %p2341_p6 = scmp.lt.s32.totalorder %s2335_s23, %s2335_s23 }
0x17fc   :  { %v1648_v22 = vsel %vm1647_vm9, %v1646_v47, %v1627_v15 }
0x17fd   :  { %v1650_v49 = vsel %vm1649_vm10, %v1648_v22, %v1631_v46  ;;  %p2342_p7 = por %p2341_p6, %p2340_p5 }
0x17fe   :  { %v1652_v50 = vsel %vm1651_vm11, %v1650_v49, %v1635_v18 }
0x17ff   :  { %p2343_p8 = pnand %p2342_p7, %p2336_p4 }
0x1816   :  { %v1639_v51 = vpop.permute.xlu0 %1638 }
0x1817   :  { %v1654_v52 = vsel %vm1653_vm12, %v1652_v50, %v1639_v51 }
0x1818   :  { %1656 = vst.msk [vmem:[#allocation9] sm:$0x3] %vm1655_vm13, %v1654_v52 }
0x1819   :  { %2346 = shalt.err (!%p2343_p8)
}
0x181a   :  { %s2347_s4 = scalar_lea.hbm %s2849_s7, 32 }
0x181b   :  { %p2348_p9 = scmp.ne.s32.totalorder %s2849_s7, %s2347_s4  ;;  %p2351_p10 = scmp.lt.u32.totalorder %s2347_s4, %s2849_s7 }
0x181d   :  { %p2353_p11 = pnand %p2351_p10, %p2348_p9 }
0x181f   :  { %2356 = shalt.err (!%p2353_p11)
}
0x1820   :  { %1676 = dma.vmem_to_hbm [thread:$0]  %s1674_s22, 32, %s2849_s7, [#allocation5]   ;;  %v1664_v28 = vpop.permute.xlu0 %1663 }
0x1821   :  { %1666 = vst.msk [vmem:[#allocation12] sm:$0x3] %vm294_vm5, %v1664_v28  ;;  %s2357_s13 = scalar_lea.vmem %s1694_s2, 32  ;;  %p2362_p13 = scmp.lt.s32.totalorder %s1694_s2, %s1694_s2 }
0x1822   :  { %p2358_p12 = scmp.ne.s32.totalorder %s1694_s2, %s2357_s13  ;;  %p2363_p0 = scmp.lt.s32.totalorder %s2357_s13, %s2357_s13 }
0x1824   :  { %p2364_p1 = por %p2363_p0, %p2362_p13 }
0x1826   :  { %p2365_p2 = pnand %p2364_p1, %p2358_p12 }
0x1828   :  { %2368 = shalt.err (!%p2365_p2)
}
0x1829   :  { %s2369_s15 = scalar_lea.hbm %s2851_s9, 32 }
0x182a   :  { %p2370_p3 = scmp.ne.s32.totalorder %s2851_s9, %s2369_s15  ;;  %p2373_p4 = scmp.lt.u32.totalorder %s2369_s15, %s2851_s9 }
0x182c   :  { %p2375_p5 = pnand %p2373_p4, %p2370_p3 }
0x182e   :  { %2378 = shalt.err (!%p2375_p5)
}
0x182f   :  { %1696 = dma.vmem_to_hbm [thread:$0]  %s1694_s2, 32, %s2851_s9, [#allocation11]  }
0x1830   :  { %2383 = dma.done.wait [#allocation5], 32  }
0x1831   :  { %2384 = vsyncadd [#allocation5], 4294967264 }
0x1832   :  { %2385 = dma.done.wait [#allocation11], 64  }
0x1833   :  { %2386 = vsyncadd [#allocation11], 4294967232 }
0x1834   :  { %1706 = vsyncpa [#allocation4], 1 }
0x1835   :  { %1707 = vsyncpa [#allocation7], 1 }
0x1836   :  { %1708 = vsyncpa [#allocation5], 1 }
0x1837   :  { %1709 = vsyncpa [#allocation11], 1 }

</bundles_post_ra>
